<compile_context>
chip_gen: v5e
topology: v5e:2x2
jax: 0.10.0
libtpu: 0.0.40
codegen_flags: <defaults>
</compile_context>

<pallas_src>
import functools

import jax
import jax.numpy as jnp
from jax.experimental import pallas as pl
from jax.experimental.pallas import tpu as pltpu


def _window_attention_kernel(x_ref, wqkv_ref, bqkv_ref, bias_ref,
                             wproj_ref, bproj_ref, o_ref,
                             *, num_heads, windows, seq):
    """One grid step = `windows` complete attention windows.

    x_ref    : (windows*seq, C)              activations (f32 or bf16)
    wqkv_ref : (C, 3C)                        q-columns pre-scaled by qk scale
    bqkv_ref : (1, 3C)  f32                   q-part pre-scaled
    bias_ref : (num_heads, windows, seq, seq) f32, rel-pos bias (+ shift mask) fused
    wproj_ref: (C, C)
    bproj_ref: (1, C)  f32
    o_ref    : (windows*seq, C)
    """
    x = x_ref[...]
    rows, C = x.shape                       # rows = windows * seq
    hd = C // num_heads
    cdt = x.dtype                           # MXU operand dtype (bf16 or f32)

    # ---- fused QKV projection for all `windows` windows at once (one MXU matmul) ----
    qkv = jnp.dot(x, wqkv_ref[...], preferred_element_type=jnp.float32)
    qkv = (qkv + bqkv_ref[...]).astype(cdt)          # (rows, 3C)

    q = qkv[:, 0 * C:1 * C]                          # qk scale already folded into weight
    k = qkv[:, 1 * C:2 * C]
    v = qkv[:, 2 * C:3 * C]

    wproj = wproj_ref[...]                           # (C, C), resident in VMEM

    out = None
    # Static unroll over heads; every matmul inside is batched over the `windows` dim.
    for h in range(num_heads):
        lo = h * hd
        qh = q[:, lo:lo + hd].reshape(windows, seq, hd)
        kh = k[:, lo:lo + hd].reshape(windows, seq, hd)
        vh = v[:, lo:lo + hd].reshape(windows, seq, hd)

        s = jnp.einsum('wnd,wmd->wnm', qh, kh,
                       preferred_element_type=jnp.float32)       # (windows, seq, seq)
        s = s + bias_ref[h]                                      # fused rel-pos (+mask), f32

        # numerically stable softmax in f32; reciprocal runs on the EUP (free slot)
        s = s - jnp.max(s, axis=-1, keepdims=True)
        p = jnp.exp(s)
        p = p * pl.reciprocal(jnp.sum(p, axis=-1, keepdims=True), approx=True)

        # TODO(synk): attn_drop / proj_drop are p=0.0 Dropout -> identity at inference; omitted.
        ctx = jnp.einsum('wnm,wmd->wnd', p.astype(cdt), vh,
                         preferred_element_type=jnp.float32)     # (windows, seq, hd)

        # fused head-concat + output projection: accumulate ctx_h @ Wproj[h-th row block]
        contrib = jnp.dot(ctx.reshape(rows, hd).astype(cdt),
                          wproj[lo:lo + hd, :],
                          preferred_element_type=jnp.float32)    # (rows, C)
        out = contrib if out is None else out + contrib

    out = out + bproj_ref[...]
    o_ref[...] = out.astype(o_ref.dtype)


def _choose_windows_per_block(B_, base, seq, target_rows=256):
    """Windows per grid step: a multiple of `base` (mask period) dividing B_,
    large enough to give the flattened matmuls a decent M dim, while keeping
    >= 2 parallel grid steps when possible (v7x has 2 TensorCores)."""
    cands = [w for w in range(base, B_ + 1, base) if B_ % w == 0]
    wb = cands[0]
    for w in cands:
        if B_ // w >= 2:
            wb = w
        if w * seq >= target_rows:
            break
    return wb


def window_attention_pallas(x, wqkv, bqkv, rel_bias, wproj, bproj,
                            num_heads, scale, mask=None):
    B_, N, C = x.shape
    assert C % num_heads == 0

    # Fold qk scale into the q-columns of the qkv projection (one-time preprocessing;
    # in a real model do this at weight-load time).
    wqkv = wqkv.at[:, :C].multiply(jnp.asarray(scale, wqkv.dtype))
    bqkv = bqkv.at[:C].multiply(jnp.asarray(scale, bqkv.dtype))

    if mask is not None:
        nW = mask.shape[0]
        assert B_ % nW == 0
        base = nW                           # block must cover a whole mask period
    else:
        base = 1
    wb = _choose_windows_per_block(B_, base, N)
    rows = wb * N
    grid = (B_ // wb,)

    # Fuse relative-position bias and the (optional) shift mask into one per-block
    # additive bias: (H, wb, N, N).  Window j inside a block uses mask[j % nW],
    # identical for every block because wb % nW == 0.
    rel = rel_bias.astype(jnp.float32)[:, None]                  # (H, 1, N, N)
    if mask is not None:
        m = jnp.tile(mask.astype(jnp.float32), (wb // nW, 1, 1))[None]  # (1, wb, N, N)
        bias_fused = rel + m                                     # (H, wb, N, N)
    else:
        bias_fused = jnp.broadcast_to(rel, (num_heads, wb, N, N))

    x2 = x.reshape(B_ * N, C)                                    # lane-layout-preserving
    bqkv2 = bqkv.reshape(1, 3 * C).astype(jnp.float32)
    bproj2 = bproj.reshape(1, C).astype(jnp.float32)

    kernel = functools.partial(_window_attention_kernel,
                               num_heads=num_heads, windows=wb, seq=N)

    # Rough scoped-VMEM budget (double-buffered blocks + f32 temps) with headroom,
    # so growing wb / C does not trip the default scoped-VMEM limit.
    act_b = x.dtype.itemsize
    wgt_b = wqkv.dtype.itemsize
    blk = (2 * rows * C * act_b                      # x + out blocks
           + num_heads * wb * N * N * 4              # fused bias (f32)
           + 3 * C * C * wgt_b + C * C * wgt_b       # weights (resident)
           + 4 * C * 4)                              # vector biases
    tmp = 4 * rows * 3 * C * 4                       # f32 qkv / per-head temporaries
    vmem_limit = int(min(max(3 * (2 * blk + tmp), 8 * 2 ** 20), 64 * 2 ** 20))

    out2 = pl.pallas_call(
        kernel,
        out_shape=jax.ShapeDtypeStruct((B_ * N, C), x.dtype),
        grid=grid,
        in_specs=[
            pl.BlockSpec((rows, C), lambda i: (i, 0)),                       # x: wb windows
            pl.BlockSpec((C, 3 * C), lambda i: (0, 0)),                      # qkv weight (resident)
            pl.BlockSpec((1, 3 * C), lambda i: (0, 0)),                      # qkv bias
            pl.BlockSpec((num_heads, wb, N, N), lambda i: (0, 0, 0, 0)),     # fused rel-bias+mask
            pl.BlockSpec((C, C), lambda i: (0, 0)),                          # proj weight
            pl.BlockSpec((1, C), lambda i: (0, 0)),                          # proj bias
        ],
        out_specs=pl.BlockSpec((rows, C), lambda i: (i, 0)),
        compiler_params=pltpu.CompilerParams(
            dimension_semantics=("parallel",),
            vmem_limit_bytes=vmem_limit),
    )(x2, wqkv, bqkv2, bias_fused, wproj, bproj2)

    return out2.reshape(B_, N, C)


def build_relative_position_index(window_size):
    Wh, Ww = window_size
    coords_h = jnp.arange(Wh)
    coords_w = jnp.arange(Ww)
    coords = jnp.stack(jnp.meshgrid(coords_h, coords_w, indexing="ij"))   # (2, Wh, Ww)
    coords_flatten = coords.reshape(2, -1)                                # (2, N)
    rel = coords_flatten[:, :, None] - coords_flatten[:, None, :]         # (2, N, N)
    rel = rel.transpose(1, 2, 0)                                          # (N, N, 2)
    rel = rel.at[:, :, 0].add(Wh - 1)
    rel = rel.at[:, :, 1].add(Ww - 1)
    rel = rel.at[:, :, 0].multiply(2 * Ww - 1)
    return rel.sum(-1)                                                    # (N, N)


def reference_window_attention(x, wqkv, bqkv, rel_bias, wproj, bproj,
                               num_heads, scale, mask):
    B_, N, C = x.shape
    hd = C // num_heads
    qkv = x @ wqkv + bqkv
    qkv = qkv.reshape(B_, N, 3, num_heads, hd).transpose(2, 0, 3, 1, 4)
    q, k, v = qkv[0], qkv[1], qkv[2]
    attn = (q * scale) @ jnp.swapaxes(k, -2, -1)
    attn = attn + rel_bias[None]
    nW = mask.shape[0]
    attn = attn.reshape(B_ // nW, nW, num_heads, N, N) + mask[None, :, None]
    attn = attn.reshape(B_, num_heads, N, N)
    attn = jax.nn.softmax(attn, axis=-1)
    out = (attn @ v).transpose(0, 2, 1, 3).reshape(B_, N, C)
    return out @ wproj + bproj


if __name__ == "__main__":
    dim = 32
    window_size = (4, 4)
    num_heads = 4
    head_dim = dim // num_heads
    scale = head_dim ** (-0.5)
    N = window_size[0] * window_size[1]          # 16
    batch, nW = 2, 4
    B_ = batch * nW                              # 8 windows total

    key = jax.random.PRNGKey(0)
    k_x, k_tbl, k_wqkv, k_bqkv, k_wproj, k_bproj, k_mask = jax.random.split(key, 7)

    x = jax.random.normal(k_x, (B_, N, dim), dtype=jnp.float32)

    table_size = (2 * window_size[0] - 1) * (2 * window_size[1] - 1)
    rel_pos_table = 0.02 * jax.random.normal(k_tbl, (table_size, num_heads), dtype=jnp.float32)
    wqkv = 0.02 * jax.random.normal(k_wqkv, (dim, 3 * dim), dtype=jnp.float32)
    bqkv = 0.02 * jax.random.normal(k_bqkv, (3 * dim,), dtype=jnp.float32)
    wproj = 0.02 * jax.random.normal(k_wproj, (dim, dim), dtype=jnp.float32)
    bproj = 0.02 * jax.random.normal(k_bproj, (dim,), dtype=jnp.float32)

    # gather relative position bias from the table (plain JAX glue)
    rel_index = build_relative_position_index(window_size)                  # (N, N)
    rel_bias = rel_pos_table[rel_index.reshape(-1)].reshape(N, N, num_heads)
    rel_bias = rel_bias.transpose(2, 0, 1)                                  # (H, N, N)

    # shifted-window style additive mask: 0 / -100 per window
    mask_bits = jax.random.bernoulli(k_mask, p=0.2, shape=(nW, N, N))
    mask = jnp.where(mask_bits, -100.0, 0.0).astype(jnp.float32)

    # --- masked (shifted-window) path, f32 ---
    out = window_attention_pallas(x, wqkv, bqkv, rel_bias, wproj, bproj,
                                  num_heads, scale, mask=mask)
    out = jax.block_until_ready(out)
    ref = reference_window_attention(x, wqkv, bqkv, rel_bias, wproj, bproj,
                                     num_heads, scale, mask)
    assert out.shape == (B_, N, dim)
    assert jnp.allclose(out, ref, rtol=2e-3, atol=2e-3), (
        f"masked f32 max abs diff {jnp.max(jnp.abs(out - ref))}")

    # --- no-mask (non-shifted) path, f32 (static mask handling: no mask operand) ---
    out_nm = window_attention_pallas(x, wqkv, bqkv, rel_bias, wproj, bproj,
                                     num_heads, scale, mask=None)
    out_nm = jax.block_until_ready(out_nm)
    ref_nm = reference_window_attention(x, wqkv, bqkv, rel_bias, wproj, bproj,
                                        num_heads, scale,
                                        jnp.zeros((1, N, N), jnp.float32))
    assert jnp.allclose(out_nm, ref_nm, rtol=2e-3, atol=2e-3), (
        f"no-mask f32 max abs diff {jnp.max(jnp.abs(out_nm - ref_nm))}")

    # --- bf16 activations/weights into the MXU (f32 accumulate + f32 softmax) ---
    out_bf = window_attention_pallas(x.astype(jnp.bfloat16),
                                     wqkv.astype(jnp.bfloat16), bqkv,
                                     rel_bias,
                                     wproj.astype(jnp.bfloat16), bproj,
                                     num_heads, scale, mask=mask)
    out_bf = jax.block_until_ready(out_bf)
    assert out_bf.dtype == jnp.bfloat16
    assert jnp.allclose(out_bf.astype(jnp.float32), ref, rtol=5e-2, atol=5e-2), (
        f"bf16 max abs diff {jnp.max(jnp.abs(out_bf.astype(jnp.float32) - ref))}")

    print("KERNEL_OK")
</pallas_src>

<mosaic_0001>
module attributes {stable_mosaic.version = 11 : i64} {
  func.func @_window_attention_kernel(%arg0: i32, %arg1: memref<64x32xf32, #tpu.memory_space<vmem>>, %arg2: memref<32x96xf32, #tpu.memory_space<vmem>>, %arg3: memref<1x96xf32, #tpu.memory_space<vmem>>, %arg4: memref<4x4x16x16xf32, #tpu.memory_space<vmem>>, %arg5: memref<32x32xf32, #tpu.memory_space<vmem>>, %arg6: memref<1x32xf32, #tpu.memory_space<vmem>>, %arg7: memref<64x32xf32, #tpu.memory_space<vmem>>) attributes {dimension_semantics = [#tpu.dimension_semantics<parallel>], iteration_bounds = array<i64: 2>, scalar_prefetch = 0 : i64, scratch_operands = 0 : i64, tpu.core_type = #tpu.core_type<tc>, window_params = [{transform_indices = @transform_0, window_bounds = array<i64: 64, 32>}, {pipeline_mode = #tpu.pipeline_mode<synchronous>, transform_indices = @transform_1, window_bounds = array<i64: 32, 96>}, {pipeline_mode = #tpu.pipeline_mode<synchronous>, transform_indices = @transform_2, window_bounds = array<i64: 1, 96>}, {pipeline_mode = #tpu.pipeline_mode<synchronous>, transform_indices = @transform_3, window_bounds = array<i64: 4, 4, 16, 16>}, {pipeline_mode = #tpu.pipeline_mode<synchronous>, transform_indices = @transform_4, window_bounds = array<i64: 32, 32>}, {pipeline_mode = #tpu.pipeline_mode<synchronous>, transform_indices = @transform_5, window_bounds = array<i64: 1, 32>}, {transform_indices = @transform_6, window_bounds = array<i64: 64, 32>}]} {
    %c0 = arith.constant 0 : index
    %c0_0 = arith.constant 0 : index
    %0 = vector.load %arg1[%c0, %c0_0] : memref<64x32xf32, #tpu.memory_space<vmem>>, vector<64x32xf32>
    %c0_1 = arith.constant 0 : index
    %c0_2 = arith.constant 0 : index
    %1 = vector.load %arg2[%c0_1, %c0_2] : memref<32x96xf32, #tpu.memory_space<vmem>>, vector<32x96xf32>
    %cst = arith.constant dense<0.000000e+00> : vector<64x96xf32>
    %2 = tpu.matmul %0, %1, %cst {dimension_numbers = #tpu.dot_dimension_numbers<[1], [0], [0], [1], [0, 0, 1, 1], [], []>} : vector<64x32xf32>, vector<32x96xf32>, vector<64x96xf32> -> vector<64x96xf32>
    %c0_3 = arith.constant 0 : index
    %c0_4 = arith.constant 0 : index
    %3 = vector.load %arg3[%c0_3, %c0_4] : memref<1x96xf32, #tpu.memory_space<vmem>>, vector<1x96xf32>
    %4 = vector.broadcast %3 : vector<1x96xf32> to vector<64x96xf32>
    %5 = arith.addf %2, %4 : vector<64x96xf32>
    %6 = vector.extract_strided_slice %5 {offsets = [0, 0], sizes = [64, 32], strides = [1, 1]} : vector<64x96xf32> to vector<64x32xf32>
    %7 = vector.extract_strided_slice %5 {offsets = [0, 32], sizes = [64, 32], strides = [1, 1]} : vector<64x96xf32> to vector<64x32xf32>
    %8 = vector.extract_strided_slice %5 {offsets = [0, 64], sizes = [64, 32], strides = [1, 1]} : vector<64x96xf32> to vector<64x32xf32>
    %c0_5 = arith.constant 0 : index
    %c0_6 = arith.constant 0 : index
    %9 = vector.load %arg5[%c0_5, %c0_6] : memref<32x32xf32, #tpu.memory_space<vmem>>, vector<32x32xf32>
    %10 = vector.extract_strided_slice %6 {offsets = [0, 0], sizes = [64, 8], strides = [1, 1]} : vector<64x32xf32> to vector<64x8xf32>
    %11 = vector.shape_cast %10 : vector<64x8xf32> to vector<4x16x8xf32>
    %12 = vector.extract_strided_slice %7 {offsets = [0, 0], sizes = [64, 8], strides = [1, 1]} : vector<64x32xf32> to vector<64x8xf32>
    %13 = vector.shape_cast %12 : vector<64x8xf32> to vector<4x16x8xf32>
    %14 = vector.extract_strided_slice %8 {offsets = [0, 0], sizes = [64, 8], strides = [1, 1]} : vector<64x32xf32> to vector<64x8xf32>
    %15 = vector.shape_cast %14 : vector<64x8xf32> to vector<4x16x8xf32>
    "tpu.trace_start"() <{level = 10 : i32, message = "wnd,wmd->wnm"}> : () -> ()
    %cst_7 = arith.constant dense<0.000000e+00> : vector<4x16x16xf32>
    %16 = tpu.matmul %11, %13, %cst_7 {dimension_numbers = #tpu.dot_dimension_numbers<[2], [2], [1], [1], [0, 0, 0, 1, 1, 1], [0], [0]>} : vector<4x16x8xf32>, vector<4x16x8xf32>, vector<4x16x16xf32> -> vector<4x16x16xf32>
    "tpu.trace_stop"() : () -> ()
    %c0_8 = arith.constant 0 : index
    %c0_9 = arith.constant 0 : index
    %c0_10 = arith.constant 0 : index
    %c0_11 = arith.constant 0 : index
    %17 = vector.load %arg4[%c0_8, %c0_9, %c0_10, %c0_11] : memref<4x4x16x16xf32, #tpu.memory_space<vmem>>, vector<1x4x16x16xf32>
    %18 = vector.shape_cast %17 : vector<1x4x16x16xf32> to vector<4x16x16xf32>
    %19 = arith.addf %16, %18 : vector<4x16x16xf32>
    %cst_12 = arith.constant dense<0xFF800000> : vector<4x16xf32>
    %20 = vector.multi_reduction <maximumf>, %19, %cst_12 [2] : vector<4x16x16xf32> to vector<4x16xf32>
    %21 = vector.shape_cast %20 : vector<4x16xf32> to vector<4x16x1xf32>
    %22 = vector.broadcast %21 : vector<4x16x1xf32> to vector<4x16x16xf32>
    %23 = arith.subf %19, %22 : vector<4x16x16xf32>
    %24 = math.exp %23 : vector<4x16x16xf32>
    %cst_13 = arith.constant dense<0.000000e+00> : vector<4x16xf32>
    %25 = vector.multi_reduction <add>, %24, %cst_13 [2] : vector<4x16x16xf32> to vector<4x16xf32>
    %26 = vector.shape_cast %25 : vector<4x16xf32> to vector<4x16x1xf32>
    %27 = tpu.reciprocal %26 {approx = true} : vector<4x16x1xf32> -> vector<4x16x1xf32>
    %28 = vector.broadcast %27 : vector<4x16x1xf32> to vector<4x16x16xf32>
    %29 = arith.mulf %24, %28 : vector<4x16x16xf32>
    "tpu.trace_start"() <{level = 10 : i32, message = "wnm,wmd->wnd"}> : () -> ()
    %cst_14 = arith.constant dense<0.000000e+00> : vector<4x16x8xf32>
    %30 = tpu.matmul %29, %15, %cst_14 {dimension_numbers = #tpu.dot_dimension_numbers<[2], [1], [1], [2], [0, 0, 0, 1, 1, 2], [0], [0]>} : vector<4x16x16xf32>, vector<4x16x8xf32>, vector<4x16x8xf32> -> vector<4x16x8xf32>
    "tpu.trace_stop"() : () -> ()
    %31 = vector.shape_cast %30 : vector<4x16x8xf32> to vector<64x8xf32>
    %32 = vector.extract_strided_slice %9 {offsets = [0, 0], sizes = [8, 32], strides = [1, 1]} : vector<32x32xf32> to vector<8x32xf32>
    %cst_15 = arith.constant dense<0.000000e+00> : vector<64x32xf32>
    %33 = tpu.matmul %31, %32, %cst_15 {dimension_numbers = #tpu.dot_dimension_numbers<[1], [0], [0], [1], [0, 0, 1, 1], [], []>} : vector<64x8xf32>, vector<8x32xf32>, vector<64x32xf32> -> vector<64x32xf32>
    %34 = vector.extract_strided_slice %6 {offsets = [0, 8], sizes = [64, 8], strides = [1, 1]} : vector<64x32xf32> to vector<64x8xf32>
    %35 = vector.shape_cast %34 : vector<64x8xf32> to vector<4x16x8xf32>
    %36 = vector.extract_strided_slice %7 {offsets = [0, 8], sizes = [64, 8], strides = [1, 1]} : vector<64x32xf32> to vector<64x8xf32>
    %37 = vector.shape_cast %36 : vector<64x8xf32> to vector<4x16x8xf32>
    %38 = vector.extract_strided_slice %8 {offsets = [0, 8], sizes = [64, 8], strides = [1, 1]} : vector<64x32xf32> to vector<64x8xf32>
    %39 = vector.shape_cast %38 : vector<64x8xf32> to vector<4x16x8xf32>
    "tpu.trace_start"() <{level = 10 : i32, message = "wnd,wmd->wnm"}> : () -> ()
    %cst_16 = arith.constant dense<0.000000e+00> : vector<4x16x16xf32>
    %40 = tpu.matmul %35, %37, %cst_16 {dimension_numbers = #tpu.dot_dimension_numbers<[2], [2], [1], [1], [0, 0, 0, 1, 1, 1], [0], [0]>} : vector<4x16x8xf32>, vector<4x16x8xf32>, vector<4x16x16xf32> -> vector<4x16x16xf32>
    "tpu.trace_stop"() : () -> ()
    %c1 = arith.constant 1 : index
    %c0_17 = arith.constant 0 : index
    %c0_18 = arith.constant 0 : index
    %c0_19 = arith.constant 0 : index
    %41 = vector.load %arg4[%c1, %c0_17, %c0_18, %c0_19] : memref<4x4x16x16xf32, #tpu.memory_space<vmem>>, vector<1x4x16x16xf32>
    %42 = vector.shape_cast %41 : vector<1x4x16x16xf32> to vector<4x16x16xf32>
    %43 = arith.addf %40, %42 : vector<4x16x16xf32>
    %cst_20 = arith.constant dense<0xFF800000> : vector<4x16xf32>
    %44 = vector.multi_reduction <maximumf>, %43, %cst_20 [2] : vector<4x16x16xf32> to vector<4x16xf32>
    %45 = vector.shape_cast %44 : vector<4x16xf32> to vector<4x16x1xf32>
    %46 = vector.broadcast %45 : vector<4x16x1xf32> to vector<4x16x16xf32>
    %47 = arith.subf %43, %46 : vector<4x16x16xf32>
    %48 = math.exp %47 : vector<4x16x16xf32>
    %cst_21 = arith.constant dense<0.000000e+00> : vector<4x16xf32>
    %49 = vector.multi_reduction <add>, %48, %cst_21 [2] : vector<4x16x16xf32> to vector<4x16xf32>
    %50 = vector.shape_cast %49 : vector<4x16xf32> to vector<4x16x1xf32>
    %51 = tpu.reciprocal %50 {approx = true} : vector<4x16x1xf32> -> vector<4x16x1xf32>
    %52 = vector.broadcast %51 : vector<4x16x1xf32> to vector<4x16x16xf32>
    %53 = arith.mulf %48, %52 : vector<4x16x16xf32>
    "tpu.trace_start"() <{level = 10 : i32, message = "wnm,wmd->wnd"}> : () -> ()
    %cst_22 = arith.constant dense<0.000000e+00> : vector<4x16x8xf32>
    %54 = tpu.matmul %53, %39, %cst_22 {dimension_numbers = #tpu.dot_dimension_numbers<[2], [1], [1], [2], [0, 0, 0, 1, 1, 2], [0], [0]>} : vector<4x16x16xf32>, vector<4x16x8xf32>, vector<4x16x8xf32> -> vector<4x16x8xf32>
    "tpu.trace_stop"() : () -> ()
    %55 = vector.shape_cast %54 : vector<4x16x8xf32> to vector<64x8xf32>
    %56 = vector.extract_strided_slice %9 {offsets = [8, 0], sizes = [8, 32], strides = [1, 1]} : vector<32x32xf32> to vector<8x32xf32>
    %cst_23 = arith.constant dense<0.000000e+00> : vector<64x32xf32>
    %57 = tpu.matmul %55, %56, %cst_23 {dimension_numbers = #tpu.dot_dimension_numbers<[1], [0], [0], [1], [0, 0, 1, 1], [], []>} : vector<64x8xf32>, vector<8x32xf32>, vector<64x32xf32> -> vector<64x32xf32>
    %58 = arith.addf %33, %57 : vector<64x32xf32>
    %59 = vector.extract_strided_slice %6 {offsets = [0, 16], sizes = [64, 8], strides = [1, 1]} : vector<64x32xf32> to vector<64x8xf32>
    %60 = vector.shape_cast %59 : vector<64x8xf32> to vector<4x16x8xf32>
    %61 = vector.extract_strided_slice %7 {offsets = [0, 16], sizes = [64, 8], strides = [1, 1]} : vector<64x32xf32> to vector<64x8xf32>
    %62 = vector.shape_cast %61 : vector<64x8xf32> to vector<4x16x8xf32>
    %63 = vector.extract_strided_slice %8 {offsets = [0, 16], sizes = [64, 8], strides = [1, 1]} : vector<64x32xf32> to vector<64x8xf32>
    %64 = vector.shape_cast %63 : vector<64x8xf32> to vector<4x16x8xf32>
    "tpu.trace_start"() <{level = 10 : i32, message = "wnd,wmd->wnm"}> : () -> ()
    %cst_24 = arith.constant dense<0.000000e+00> : vector<4x16x16xf32>
    %65 = tpu.matmul %60, %62, %cst_24 {dimension_numbers = #tpu.dot_dimension_numbers<[2], [2], [1], [1], [0, 0, 0, 1, 1, 1], [0], [0]>} : vector<4x16x8xf32>, vector<4x16x8xf32>, vector<4x16x16xf32> -> vector<4x16x16xf32>
    "tpu.trace_stop"() : () -> ()
    %c2 = arith.constant 2 : index
    %c0_25 = arith.constant 0 : index
    %c0_26 = arith.constant 0 : index
    %c0_27 = arith.constant 0 : index
    %66 = vector.load %arg4[%c2, %c0_25, %c0_26, %c0_27] : memref<4x4x16x16xf32, #tpu.memory_space<vmem>>, vector<1x4x16x16xf32>
    %67 = vector.shape_cast %66 : vector<1x4x16x16xf32> to vector<4x16x16xf32>
    %68 = arith.addf %65, %67 : vector<4x16x16xf32>
    %cst_28 = arith.constant dense<0xFF800000> : vector<4x16xf32>
    %69 = vector.multi_reduction <maximumf>, %68, %cst_28 [2] : vector<4x16x16xf32> to vector<4x16xf32>
    %70 = vector.shape_cast %69 : vector<4x16xf32> to vector<4x16x1xf32>
    %71 = vector.broadcast %70 : vector<4x16x1xf32> to vector<4x16x16xf32>
    %72 = arith.subf %68, %71 : vector<4x16x16xf32>
    %73 = math.exp %72 : vector<4x16x16xf32>
    %cst_29 = arith.constant dense<0.000000e+00> : vector<4x16xf32>
    %74 = vector.multi_reduction <add>, %73, %cst_29 [2] : vector<4x16x16xf32> to vector<4x16xf32>
    %75 = vector.shape_cast %74 : vector<4x16xf32> to vector<4x16x1xf32>
    %76 = tpu.reciprocal %75 {approx = true} : vector<4x16x1xf32> -> vector<4x16x1xf32>
    %77 = vector.broadcast %76 : vector<4x16x1xf32> to vector<4x16x16xf32>
    %78 = arith.mulf %73, %77 : vector<4x16x16xf32>
    "tpu.trace_start"() <{level = 10 : i32, message = "wnm,wmd->wnd"}> : () -> ()
    %cst_30 = arith.constant dense<0.000000e+00> : vector<4x16x8xf32>
    %79 = tpu.matmul %78, %64, %cst_30 {dimension_numbers = #tpu.dot_dimension_numbers<[2], [1], [1], [2], [0, 0, 0, 1, 1, 2], [0], [0]>} : vector<4x16x16xf32>, vector<4x16x8xf32>, vector<4x16x8xf32> -> vector<4x16x8xf32>
    "tpu.trace_stop"() : () -> ()
    %80 = vector.shape_cast %79 : vector<4x16x8xf32> to vector<64x8xf32>
    %81 = vector.extract_strided_slice %9 {offsets = [16, 0], sizes = [8, 32], strides = [1, 1]} : vector<32x32xf32> to vector<8x32xf32>
    %cst_31 = arith.constant dense<0.000000e+00> : vector<64x32xf32>
    %82 = tpu.matmul %80, %81, %cst_31 {dimension_numbers = #tpu.dot_dimension_numbers<[1], [0], [0], [1], [0, 0, 1, 1], [], []>} : vector<64x8xf32>, vector<8x32xf32>, vector<64x32xf32> -> vector<64x32xf32>
    %83 = arith.addf %58, %82 : vector<64x32xf32>
    %84 = vector.extract_strided_slice %6 {offsets = [0, 24], sizes = [64, 8], strides = [1, 1]} : vector<64x32xf32> to vector<64x8xf32>
    %85 = vector.shape_cast %84 : vector<64x8xf32> to vector<4x16x8xf32>
    %86 = vector.extract_strided_slice %7 {offsets = [0, 24], sizes = [64, 8], strides = [1, 1]} : vector<64x32xf32> to vector<64x8xf32>
    %87 = vector.shape_cast %86 : vector<64x8xf32> to vector<4x16x8xf32>
    %88 = vector.extract_strided_slice %8 {offsets = [0, 24], sizes = [64, 8], strides = [1, 1]} : vector<64x32xf32> to vector<64x8xf32>
    %89 = vector.shape_cast %88 : vector<64x8xf32> to vector<4x16x8xf32>
    "tpu.trace_start"() <{level = 10 : i32, message = "wnd,wmd->wnm"}> : () -> ()
    %cst_32 = arith.constant dense<0.000000e+00> : vector<4x16x16xf32>
    %90 = tpu.matmul %85, %87, %cst_32 {dimension_numbers = #tpu.dot_dimension_numbers<[2], [2], [1], [1], [0, 0, 0, 1, 1, 1], [0], [0]>} : vector<4x16x8xf32>, vector<4x16x8xf32>, vector<4x16x16xf32> -> vector<4x16x16xf32>
    "tpu.trace_stop"() : () -> ()
    %c3 = arith.constant 3 : index
    %c0_33 = arith.constant 0 : index
    %c0_34 = arith.constant 0 : index
    %c0_35 = arith.constant 0 : index
    %91 = vector.load %arg4[%c3, %c0_33, %c0_34, %c0_35] : memref<4x4x16x16xf32, #tpu.memory_space<vmem>>, vector<1x4x16x16xf32>
    %92 = vector.shape_cast %91 : vector<1x4x16x16xf32> to vector<4x16x16xf32>
    %93 = arith.addf %90, %92 : vector<4x16x16xf32>
    %cst_36 = arith.constant dense<0xFF800000> : vector<4x16xf32>
    %94 = vector.multi_reduction <maximumf>, %93, %cst_36 [2] : vector<4x16x16xf32> to vector<4x16xf32>
    %95 = vector.shape_cast %94 : vector<4x16xf32> to vector<4x16x1xf32>
    %96 = vector.broadcast %95 : vector<4x16x1xf32> to vector<4x16x16xf32>
    %97 = arith.subf %93, %96 : vector<4x16x16xf32>
    %98 = math.exp %97 : vector<4x16x16xf32>
    %cst_37 = arith.constant dense<0.000000e+00> : vector<4x16xf32>
    %99 = vector.multi_reduction <add>, %98, %cst_37 [2] : vector<4x16x16xf32> to vector<4x16xf32>
    %100 = vector.shape_cast %99 : vector<4x16xf32> to vector<4x16x1xf32>
    %101 = tpu.reciprocal %100 {approx = true} : vector<4x16x1xf32> -> vector<4x16x1xf32>
    %102 = vector.broadcast %101 : vector<4x16x1xf32> to vector<4x16x16xf32>
    %103 = arith.mulf %98, %102 : vector<4x16x16xf32>
    "tpu.trace_start"() <{level = 10 : i32, message = "wnm,wmd->wnd"}> : () -> ()
    %cst_38 = arith.constant dense<0.000000e+00> : vector<4x16x8xf32>
    %104 = tpu.matmul %103, %89, %cst_38 {dimension_numbers = #tpu.dot_dimension_numbers<[2], [1], [1], [2], [0, 0, 0, 1, 1, 2], [0], [0]>} : vector<4x16x16xf32>, vector<4x16x8xf32>, vector<4x16x8xf32> -> vector<4x16x8xf32>
    "tpu.trace_stop"() : () -> ()
    %105 = vector.shape_cast %104 : vector<4x16x8xf32> to vector<64x8xf32>
    %106 = vector.extract_strided_slice %9 {offsets = [24, 0], sizes = [8, 32], strides = [1, 1]} : vector<32x32xf32> to vector<8x32xf32>
    %cst_39 = arith.constant dense<0.000000e+00> : vector<64x32xf32>
    %107 = tpu.matmul %105, %106, %cst_39 {dimension_numbers = #tpu.dot_dimension_numbers<[1], [0], [0], [1], [0, 0, 1, 1], [], []>} : vector<64x8xf32>, vector<8x32xf32>, vector<64x32xf32> -> vector<64x32xf32>
    %108 = arith.addf %83, %107 : vector<64x32xf32>
    %c0_40 = arith.constant 0 : index
    %c0_41 = arith.constant 0 : index
    %109 = vector.load %arg6[%c0_40, %c0_41] : memref<1x32xf32, #tpu.memory_space<vmem>>, vector<1x32xf32>
    %110 = vector.broadcast %109 : vector<1x32xf32> to vector<64x32xf32>
    %111 = arith.addf %108, %110 : vector<64x32xf32>
    %c0_42 = arith.constant 0 : index
    %c0_43 = arith.constant 0 : index
    %112 = vector.load %arg7[%c0_42, %c0_43] : memref<64x32xf32, #tpu.memory_space<vmem>>, vector<64x32xf32>
    tpu.vector_store %arg7[%c0_42, %c0_43], %111 {strides = array<i32>} : memref<64x32xf32, #tpu.memory_space<vmem>>, vector<64x32xf32>,
    return
  }
  func.func @transform_0(%arg0: i32) -> (i32, i32) {
    %c0_i32 = arith.constant 0 : i32
    %c0_i32_0 = arith.constant 0 : i32
    return %arg0, %c0_i32 : i32, i32
  }
  func.func @transform_1(%arg0: i32) -> (i32, i32) {
    %c0_i32 = arith.constant 0 : i32
    %c0_i32_0 = arith.constant 0 : i32
    %c0_i32_1 = arith.constant 0 : i32
    return %c0_i32, %c0_i32_0 : i32, i32
  }
  func.func @transform_2(%arg0: i32) -> (i32, i32) {
    %c0_i32 = arith.constant 0 : i32
    %c0_i32_0 = arith.constant 0 : i32
    %c0_i32_1 = arith.constant 0 : i32
    return %c0_i32, %c0_i32_0 : i32, i32
  }
  func.func @transform_3(%arg0: i32) -> (i32, i32, i32, i32) {
    %c0_i32 = arith.constant 0 : i32
    %c0_i32_0 = arith.constant 0 : i32
    %c0_i32_1 = arith.constant 0 : i32
    %c0_i32_2 = arith.constant 0 : i32
    %c0_i32_3 = arith.constant 0 : i32
    return %c0_i32, %c0_i32_0, %c0_i32_1, %c0_i32_2 : i32, i32, i32, i32
  }
  func.func @transform_4(%arg0: i32) -> (i32, i32) {
    %c0_i32 = arith.constant 0 : i32
    %c0_i32_0 = arith.constant 0 : i32
    %c0_i32_1 = arith.constant 0 : i32
    return %c0_i32, %c0_i32_0 : i32, i32
  }
  func.func @transform_5(%arg0: i32) -> (i32, i32) {
    %c0_i32 = arith.constant 0 : i32
    %c0_i32_0 = arith.constant 0 : i32
    %c0_i32_1 = arith.constant 0 : i32
    return %c0_i32, %c0_i32_0 : i32, i32
  }
  func.func @transform_6(%arg0: i32) -> (i32, i32) {
    %c0_i32 = arith.constant 0 : i32
    %c0_i32_0 = arith.constant 0 : i32
    return %arg0, %c0_i32 : i32, i32
  }
}

</mosaic_0001>

<bundles_post_ra>
// kernel: tpu_custom_call.1
= control target key start
LH: loop header
LB: loop body
LE: loop exit
PB: predicated region body
PF: predicated region fallthrough
CT: control target
= control target key end

     0   :  { %11 = vsyncpa [#allocation3], 0  ;;  %s2769_s21 = smov 0   ;;  %s3500_s0 = inlined_call_operand.vmem [shape: f32[128,32], index: 0, kind: input, shape index: {}]   ;;  %s3501_s1 = inlined_call_operand.vmem [shape: f32[32,96], index: 1, kind: input, shape index: {}]   ;;  %s3502_s2 = inlined_call_operand.vmem [shape: f32[1,96], index: 2, kind: input, shape index: {}]   ;;  %s3503_s3 = inlined_call_operand.hbm [shape: f32[4,4,16,16], index: 3, kind: input, shape index: {}]   ;;  %s3504_s4 = inlined_call_operand.vmem [shape: f32[32,32], index: 4, kind: input, shape index: {}]   ;;  %s3505_s5 = inlined_call_operand.vmem [shape: f32[1,32], index: 5, kind: input, shape index: {}]   ;;  %s3506_s6 = inlined_call_operand.vmem [shape: f32[128,32], index: 6, kind: output, shape index: {}]  }
   0x1 LB: > { %s196_s24 = sshll.u32 %s3503_s3, 4  ;;  %s2287_s25 = sadd.s32 4294967295, %s2718_s21   ;;  %s2718_s21 = sphi %s2769_s21, %s17_s21   ;;  %s197_s24 = int_to_ptr.hbm [resolvable:$true] %s196_s24 }
   0x2   : > { %p2289_p0 = scmp.ge.s32.totalorder %s2718_s21, 1  ;;  %p179_p1 = scmp.lt.s32.totalorder %s2718_s21, 3 }
   0x3   : > { %p2444_p2 = scmp.eq.s32.totalorder %s2287_s25, 0  ;;  %s2720_s26 = smov [#allocation2]  }
   0x4   : > { %p180_p3 = pnand %p2289_p0, %p179_p1  ;;  %s198_s27 = sshll.u32 %s2720_s26, 4  ;;  %s199_s27 = int_to_ptr.vmem [resolvable:$true] %s198_s27 }
   0x5   : > { %s2721_s28 = smov 128   ;;  %s2722_s29 = smov 8  }
   0x6   : > { %p2440_p4 = pneg %p180_p3  ;;  %229 = sbr.rel (%p180_p3) target bundleno = 2643 (0xa53), region = 44 }
   0x8   : > { %p2441_p5 = pnand %p2444_p2, %p2440_p4 }
   0xa   : > { %2443 = dma.hbm_to_vmem [thread:$0]  (!%p2441_p5), %s197_s24, 4096, %s199_s27, [#allocation3], %s2721_s28, %s2721_s28, %s2722_s29  }
   0xb   : > { %2713 = dma.done.wait (%p2444_p2), [#allocation3], 4096  }
   0xc   : > { %2715 = vsyncadd (%p2444_p2), [#allocation3], 4294963200  ;;  %s2294_s30 = sshll.u32 %s2287_s25, 3  ;;  %v283_v0 = vld [vmem:[%s3501_s1 + $0x18] sm:$0xff]  ;;  %v282_v1 = vld [vmem:[%s3501_s1 + $0x10] sm:$0xff]  ;;  %vm288_vm0 = vcmask 261120  }
   0xd   : > { %p261_p6 = scmp.lt.s32.totalorder %s2294_s30, 15  ;;  %325 = vmatpush.msra.mxu0 %v283_v0  ;;  %v281_v2 = vld [vmem:[%s3501_s1 + $0x8] sm:$0xff]  ;;  %v280_v3 = vld [vmem:[%s3501_s1] sm:$0xff]  ;;  %s2723_s22 = smov 96   ;;  %vm372_vm1 = vcmask 64512   ;;  %vm515_vm2 = vcmask 130048  }
   0xe   : > { %v2548_v13 = vld [vmem:[%s3502_s2] ss:$0 sm:$0xff]  ;;  %v359_v41 = vld [vmem:[#allocation2 + $0x8] sm:$0xff]  ;;  %v360_v45 = vld [vmem:[#allocation2 + $0x10] sm:$0xff]  ;;  %s2724_s23 = smov 64   ;;  %s2725_s24 = smov 88  }
   0xf   : > { %s3508_s30 = smov (!%p261_p6, %s2294_s30), 15  ;;  %326 = vmatpush.msra.mxu0 %v282_v1  ;;  %v358_v37 = vld [vmem:[#allocation2] sm:$0xff]  ;;  %v361_v50 = vld [vmem:[#allocation2 + $0x18] sm:$0xff]  ;;  %v364_v55 = vld [vmem:[#allocation2 + $0x30] sm:$0xff]  ;;  %s2726_s25 = smov 120  }
  0x10   : > { %s2295_s7 = sshll.u32 %s3508_s30, 3  ;;  %v365_v59 = vld [vmem:[#allocation2 + $0x38] sm:$0xff]  ;;  %s2727_s26 = smov 80  }
  0x11   : > { %s264_s16 = scalar_lea.vmem %s3500_s0, %s2295_s7  ;;  %327 = vmatpush.msra.mxu0 %v281_v2  ;;  %s2728_s27 = smov 56  }
  0x12   : > { %v272_v4 = vld [vmem:[%s264_s16] sm:$0xff]  ;;  %v273_v5 = vld [vmem:[%s264_s16 + $0x8] sm:$0xff]  ;;  %v274_v6 = vld [vmem:[%s264_s16 + $0x10] sm:$0xff]  ;;  %s2729_s28 = smov 112   ;;  %s2730_s29 = smov 72  }
  0x13   : > { %328 = vmatpush.msra.mxu0 %v280_v3  ;;  %v275_v7 = vld [vmem:[%s264_s16 + $0x18] sm:$0xff]  ;;  %v276_v8 = vld [vmem:[%s264_s16 + $0x20] sm:$0xff]  ;;  %v277_v9 = vld [vmem:[%s264_s16 + $0x28] sm:$0xff]  ;;  %s2731_s10 = smov 48   ;;  %s2732_s11 = smov 104  }
  0x14   : > { %2298 = vmatmul.msk.f32.vlgmr.msra.gmra.mxu0 %vm288_vm0, %v272_v4  ;;  %v278_v10 = vld [vmem:[%s264_s16 + $0x30] sm:$0xff]  ;;  %v279_v11 = vld [vmem:[%s264_s16 + $0x38] sm:$0xff]  ;;  %s2733_s14 = smov 40  }
  0x1c   : > { %2299 = vmatmul.msk.f32.gmra.mxu0 %vm288_vm0, %v273_v5 }
  0x24   : > { %2300 = vmatmul.msk.f32.gmra.mxu0 %vm288_vm0, %v274_v6 }
  0x2c   : > { %2301 = vmatmul.msk.f32.gmra.mxu0 %vm288_vm0, %v275_v7 }
  0x34   : > { %2302 = vmatmul.msk.f32.gmra.mxu0 %vm288_vm0, %v276_v8 }
  0x3c   : > { %2303 = vmatmul.msk.f32.gmra.mxu0 %vm288_vm0, %v277_v9 }
  0x44   : > { %2304 = vmatmul.msk.f32.gmra.mxu0 %vm288_vm0, %v278_v10 }
  0x4c   : > { %2305 = vmatmul.msk.f32.gmra.mxu0 %vm288_vm0, %v279_v11 }
  0x91   : > { %v330_v12 = vpop.f32.mrf.mxu0 }
  0x92   : > { %v2814_v17 = vadd.f32 %v2548_v13, %v330_v12 }
  0x99   : > { %v333_v14 = vpop.f32.mrf.mxu0 }
  0x9a   : > { %v2811_v15 = vadd.f32 %v2548_v13, %v333_v14 }
  0x9c   : > { %370 = vrot.lane.b32.xlu0 %v2811_v15, %s2723_s22  ;;  %v2883_v63 = vpack.i.bf16 %v2814_v17, %v2811_v15 }
  0xa1   : > { %v336_v16 = vpop.f32.mrf.mxu0 }
  0xa2   : > { %v2820_v20 = vadd.f32 %v2548_v13, %v336_v16 }
  0xa4   : > { %368 = vrot.lane.b32.xlu0 %v2814_v17, %s2723_s22 }
  0xa9   : > { %v339_v18 = vpop.f32.mrf.mxu0 }
  0xaa   : > { %v2817_v19 = vadd.f32 %v2548_v13, %v339_v18 }
  0xac   : > { %408 = vrot.lane.b32.xlu1 %v2817_v19, %s2723_s22  ;;  %v2889_v0 = vpack.i.bf16 %v2820_v20, %v2817_v19 }
  0xb1   : > { %v342_v21 = vpop.f32.mrf.mxu0 }
  0xb2   : > { %v2826_v24 = vadd.f32 %v2548_v13, %v342_v21 }
  0xb4   : > { %406 = vrot.lane.b32.xlu1 %v2820_v20, %s2723_s22 }
  0xb9   : > { %v345_v22 = vpop.f32.mrf.mxu0 }
  0xba   : > { %v2823_v23 = vadd.f32 %v2548_v13, %v345_v22 }
  0xbc   : > { %445 = vrot.lane.b32.xlu2 %v2823_v23, %s2723_s22 }
  0xc1   : > { %v348_v25 = vpop.f32.mrf.mxu0 }
  0xc2   : > { %v2828_v26 = vadd.f32 %v2548_v13, %v348_v25 }
  0xc4   : > { %443 = vrot.lane.b32.xlu2 %v2826_v24, %s2723_s22  ;;  %480 = vrot.lane.b32.xlu1 %v2828_v26, %s2723_s22 }
  0xc9   : > { %v351_v27 = vpop.f32.mrf.mxu0 }
  0xca   : > { %v2832_v28 = vadd.f32 %v2548_v13, %v351_v27 }
  0xcc   : > { %482 = vrot.lane.b32.xlu0 %v2832_v28, %s2723_s22  ;;  %v2895_v1 = vpack.i.bf16 %v2828_v26, %v2832_v28 }
 0x10e   : > { %v371_v29 = vpop.permute.xlu0 %370 }
 0x10f   : > { %2306 = vmatpush.xpose.msk.msra.mxu1 %vm372_vm1, %v371_v29 }
 0x116   : > { %v369_v30 = vpop.permute.xlu0 %368  ;;  %v446_v31 = vpop.permute.xlu2 %445 }
 0x117   : > { %2307 = vmatpush.xpose.msk.msra.mxu1 %vm372_vm1, %v369_v30 }
 0x11a   : > { %2308 = vmatmul.msk.f32.vlgmr.msra.gmra.mxu1 %vm372_vm1, %v2814_v17 }
 0x11b   : > { %2314 = vmatpush.xpose.msk.msrb.mxu1 %vm372_vm1, %v446_v31 }
 0x11e   : > { %v409_v32 = vpop.permute.xlu1 %408  ;;  %v444_v33 = vpop.permute.xlu2 %443 }
 0x11f   : > { %2310 = vmatpush.xpose.msk.msra.mxu2 %vm372_vm1, %v409_v32  ;;  %2315 = vmatpush.xpose.msk.msrb.mxu1 %vm372_vm1, %v444_v33 }
 0x122   : > { %2309 = vmatmul.msk.f32.gmra.mxu1 %vm372_vm1, %v2811_v15 }
 0x126   : > { %v407_v34 = vpop.permute.xlu1 %406 }
 0x127   : > { %2311 = vmatpush.xpose.msk.msra.mxu2 %vm372_vm1, %v407_v34 }
 0x12a   : > { %2312 = vmatmul.msk.f32.vlgmr.msra.gmra.mxu2 %vm372_vm1, %v2820_v20  ;;  %2316 = vmatmul.msk.f32.vlgmr.msrb.gmra.mxu1 %vm372_vm1, %v2826_v24 }
 0x132   : > { %2313 = vmatmul.msk.f32.gmra.mxu2 %vm372_vm1, %v2817_v19  ;;  %2317 = vmatmul.msk.f32.gmra.mxu1 %vm372_vm1, %v2823_v23 }
 0x136   : > { %v481_v36 = vpop.permute.xlu1 %480 }
 0x13e   : > { %v483_v35 = vpop.permute.xlu0 %482 }
 0x13f   : > { %2318 = vmatpush.xpose.msk.msra.mxu1 %vm372_vm1, %v483_v35 }
 0x143   : > { %2319 = vmatpush.xpose.msk.msra.mxu1 %vm372_vm1, %v481_v36 }
 0x146   : > { %2320 = vmatmul.msk.f32.vlgmr.msra.gmra.mxu1 %vm372_vm1, %v2828_v26 }
 0x14e   : > { %2321 = vmatmul.msk.f32.gmra.mxu1 %vm372_vm1, %v2832_v28 }
 0x197   : > { %v398_v38 = vpop.f32.mrf.mxu1 }
 0x198   : > { %v399_v39 = vadd.f32 %v398_v38, %v358_v37 }
 0x19a   : > { %v516_v40 = vsel %vm515_vm2, %v399_v39, -inf }
 0x19b   : > { %517 = vmax.xlane.f32.xlu2 %v516_v40 }
 0x19f   : > { %v401_v42 = vpop.f32.mrf.mxu1 }
 0x1a0   : > { %v402_v43 = vadd.f32 %v401_v42, %v359_v41 }
 0x1a2   : > { %v519_v44 = vsel %vm515_vm2, %v402_v43, -inf }
 0x1a3   : > { %520 = vmax.xlane.f32.xlu0 %v519_v44 }
 0x1a7   : > { %v2865_v49 = vpop.f32.mrf.mxu1 }
 0x1ad   : > { %v435_v46 = vpop.f32.mrf.mxu2 }
 0x1ae   : > { %v2861_v47 = vadd.f32 %v435_v46, %v360_v45  ;;  %v363_v46 = vld [vmem:[#allocation2 + $0x28] sm:$0xff] }
 0x1af   : > { %v2871_v54 = vpop.f32.mrf.mxu1 }
 0x1b0   : > { %v522_v48 = vsel %vm515_vm2, %v2861_v47, -inf }
 0x1b1   : > { %523 = vmax.xlane.f32.xlu1 %v522_v48 }
 0x1b5   : > { %v438_v51 = vpop.f32.mrf.mxu2 }
 0x1b6   : > { %v2867_v52 = vadd.f32 %v438_v51, %v361_v50 }
 0x1b8   : > { %v525_v53 = vsel %vm515_vm2, %v2867_v52, -inf }
 0x1b9   : > { %526 = vmax.xlane.f32.xlu2 %v525_v53  ;;  %v2958_v53 = vpack.i.bf16 %v2826_v24, %v2823_v23 }
 0x1c3   : > { %v509_v56 = vpop.f32.mrf.mxu1 }
 0x1c4   : > { %v2873_v57 = vadd.f32 %v509_v56, %v364_v55 }
 0x1c6   : > { %v534_v58 = vsel %vm515_vm2, %v2873_v57, -inf }
 0x1c7   : > { %535 = vmax.xlane.f32.xlu2 %v534_v58 }
 0x1cb   : > { %v512_v60 = vpop.f32.mrf.mxu1 }
 0x1cc   : > { %v2877_v61 = vadd.f32 %v512_v60, %v365_v59 }
 0x1ce   : > { %v537_v62 = vsel %vm515_vm2, %v2877_v61, -inf }
 0x1cf   : > { %538 = vmax.xlane.f32.xlu0 %v537_v62 }
 0x1df   : > { %2469 = vrot.lane.b32.xlu2 %v2883_v63, %s2724_s23 }
 0x1e3   : > { %2474 = vrot.lane.b32.xlu0 %v2889_v0, %s2724_s23 }
 0x1e7   : > { %2479 = vrot.lane.b32.xlu2 %v2895_v1, %s2724_s23 }
 0x1ef   : > { %835 = vrot.lane.b32.xlu2 %v2826_v24, %s2725_s24 }
 0x1f7   : > { %757 = vrot.lane.b32.xlu2 %v2814_v17, %s2725_s24 }
 0x1ff   : > { %833 = vrot.lane.b32.xlu2 %v2823_v23, %s2726_s25 }
 0x207   : > { %876 = vrot.lane.b32.xlu2 %v2832_v28, %s2725_s24 }
 0x20e   : > { %v518_v2 = vpop.xlane.xlu2 %517 }
 0x20f   : > { %v540_v3 = vsub.f32 %v399_v39, %v518_v2  ;;  %872 = vrot.lane.b32.xlu2 %v2832_v28, %s2726_s25 }
 0x211   : > { %v548_v4 = vmul.f32 1.442695, %v540_v3 }
 0x213   : > { %2550 = vpow2.f32 %v548_v4 }
 0x216   : > { %v521_v5 = vpop.xlane.xlu0 %520 }
 0x217   : > { %v541_v6 = vsub.f32 %v402_v43, %v521_v5  ;;  %v362_v5 = vld [vmem:[#allocation2 + $0x20] sm:$0xff] }
 0x219   : > { %v2909_v7 = vpop.eup %2550  ;;  %v550_v8 = vmul.f32 1.442695, %v541_v6 }
 0x21a   : > { %v564_v9 = vsel %vm515_vm2, %v2909_v7, 0.0 }
 0x21b   : > { %2552 = vpow2.f32 %v550_v8  ;;  %565 = vadd.xlane.f32.xlu1 %v564_v9 }
 0x221   : > { %v2913_v10 = vpop.eup %2552 }
 0x222   : > { %v567_v11 = vsel %vm515_vm2, %v2913_v10, 0.0 }
 0x223   : > { %568 = vadd.xlane.f32.xlu0 %v567_v11 }
 0x224   : > { %v524_v21 = vpop.xlane.xlu1 %523 }
 0x225   : > { %v542_v22 = vsub.f32 %v2861_v47, %v524_v21  ;;  %v2950_v47 = vadd.f32 %v2871_v54, %v363_v46 }
 0x227   : > { %v552_v27 = vmul.f32 1.442695, %v542_v22  ;;  %v531_v48 = vsel %vm515_vm2, %v2950_v47, -inf }
 0x229   : > { %2554 = vpow2.f32 %v552_v27 }
 0x22c   : > { %v527_v12 = vpop.xlane.xlu2 %526 }
 0x22d   : > { %v543_v29 = vsub.f32 %v2867_v52, %v527_v12 }
 0x22f   : > { %v554_v32 = vmul.f32 1.442695, %v543_v29  ;;  %v2931_v34 = vpop.eup %2554 }
 0x230   : > { %v570_v36 = vsel %vm515_vm2, %v2931_v34, 0.0 }
 0x231   : > { %2556 = vpow2.f32 %v554_v32 }
 0x234   : > { %759 = vrot.lane.b32.xlu1 %v2811_v15, %s2725_s24 }
 0x237   : > { %837 = vrot.lane.b32.xlu0 %v2823_v23, %s2725_s24  ;;  %v2936_v38 = vpop.eup %2556 }
 0x238   : > { %v573_v40 = vsel %vm515_vm2, %v2936_v38, 0.0 }
 0x23a   : > { %v536_v13 = vpop.xlane.xlu2 %535 }
 0x23b   : > { %v546_v35 = vsub.f32 %v2873_v57, %v536_v13 }
 0x23d   : > { %v560_v37 = vmul.f32 1.442695, %v546_v35 }
 0x23f   : > { %831 = vrot.lane.b32.xlu0 %v2826_v24, %s2726_s25  ;;  %2558 = vpow2.f32 %v560_v37 }
 0x242   : > { %v2470_v14 = vpop.permute.xlu2 %2469  ;;  %v539_v25 = vpop.xlane.xlu0 %538 }
 0x243   : > { %v2471_v16 = vunpack.i.l.bf16 %v2470_v14  ;;  %v2472_v18 = vunpack.i.h.bf16 %v2470_v14  ;;  %v547_v39 = vsub.f32 %v2877_v61, %v539_v25 }
 0x245   : > { %630 = vmatpush.msrb.mxu2 %v2471_v16  ;;  %v562_v41 = vmul.f32 1.442695, %v547_v39  ;;  %v2941_v42 = vpop.eup %2558 }
 0x246   : > { %v582_v43 = vsel %vm515_vm2, %v2941_v42, 0.0 }
 0x247   : > { %631 = vmatpush.msrb.mxu2 %v2472_v18  ;;  %753 = vrot.lane.b32.xlu0 %v2814_v17, %s2726_s25  ;;  %2560 = vpow2.f32 %v562_v41 }
 0x24a   : > { %v2480_v50 = vpop.permute.xlu2 %2479 }
 0x24b   : > { %v2481_v57 = vunpack.i.l.bf16 %v2480_v50  ;;  %v2482_v59 = vunpack.i.h.bf16 %v2480_v50 }
 0x24d   : > { %v2945_v44 = vpop.eup %2560 }
 0x24e   : > { %v585_v45 = vsel %vm515_vm2, %v2945_v44, 0.0 }
 0x24f   : > { %755 = vrot.lane.b32.xlu0 %v2811_v15, %s2726_s25 }
 0x252   : > { %v836_v51 = vpop.permute.xlu2 %835 }
 0x255   : > { %v2475_v30 = vpop.permute.xlu0 %2474 }
 0x256   : > { %v2476_v31 = vunpack.i.l.bf16 %v2475_v30  ;;  %v2477_v33 = vunpack.i.h.bf16 %v2475_v30 }
 0x257   : > { %870 = vrot.lane.b32.xlu0 %v2828_v26, %s2726_s25 }
 0x258   : > { %665 = vmatpush.msra.mxu2 %v2476_v31 }
 0x25a   : > { %666 = vmatpush.msra.mxu2 %v2477_v33  ;;  %v758_v58 = vpop.permute.xlu2 %757 }
 0x25e   : > { %571 = vadd.xlane.f32.xlu1 %v570_v36 }
 0x262   : > { %v834_v62 = vpop.permute.xlu2 %833 }
 0x266   : > { %574 = vadd.xlane.f32.xlu1 %v573_v40 }
 0x26a   : > { %v877_v4 = vpop.permute.xlu2 %876 }
 0x26e   : > { %583 = vadd.xlane.f32.xlu1 %v582_v43 }
 0x272   : > { %v873_v36 = vpop.permute.xlu2 %872 }
 0x276   : > { %586 = vadd.xlane.f32.xlu1 %v585_v45 }
 0x281   : > { %532 = vmax.xlane.f32.xlu0 %v531_v48  ;;  %v751_v48 = vld [vmem:[#allocation2 + $0x70] sm:$0xff] }
 0x28e   : > { %v566_v52 = vpop.xlane.xlu1 %565 }
 0x28f   : > { %2562 = vrcp.f32 %v566_v52  ;;  %874 = vrot.lane.b32.xlu1 %v2828_v26, %s2725_s24 }
 0x295   : > { %v2563_v55 = vpop.eup %2562  ;;  %2484 = vrot.lane.b32.xlu0 %v2958_v53, %s2724_s23 }
 0x296   : > { %v569_v54 = vpop.xlane.xlu0 %568  ;;  %v596_v56 = vmul.f32 %v2563_v55, %v2909_v7  ;;  %v473_v7 = vadd.f32 %v2865_v49, %v362_v5  ;;  %v752_v55 = vld [vmem:[#allocation2 + $0x78] sm:$0xff] }
 0x297   : > { %2564 = vrcp.f32 %v569_v54 }
 0x298   : > { %2322 = vmatmul.msk.f32.vlgmr.msrb.gmra.mxu2 %vm515_vm2, %v596_v56  ;;  %v528_v8 = vsel %vm515_vm2, %v473_v7, -inf }
 0x299   : > { %735 = vmatpush.msrb.mxu2 %v2481_v57 }
 0x29b   : > { %736 = vmatpush.msrb.mxu2 %v2482_v59 }
 0x29d   : > { %v2565_v60 = vpop.eup %2564  ;;  %796 = vrot.lane.b32.xlu0 %v2820_v20, %s2725_s24 }
 0x29e   : > { %v597_v61 = vmul.f32 %v2565_v60, %v2913_v10 }
 0x2a0   : > { %2323 = vmatmul.msk.f32.gmra.mxu2 %vm515_vm2, %v597_v61 }
 0x2a6   : > { %v760_v2 = vpop.permute.xlu1 %759 }
 0x2a7   : > { %2330 = vmatpush.xpose.msk.msra.mxu3 %vm372_vm1, %v760_v2 }
 0x2a9   : > { %v838_v3 = vpop.permute.xlu0 %837 }
 0x2ab   : > { %2331 = vmatpush.xpose.msk.msra.mxu3 %vm372_vm1, %v758_v58 }
 0x2af   : > { %2342 = vmatpush.xpose.msk.msrb.mxu3 %vm372_vm1, %v877_v4 }
 0x2b1   : > { %v832_v6 = vpop.permute.xlu0 %831 }
 0x2b9   : > { %529 = vmax.xlane.f32.xlu1 %v528_v8  ;;  %v754_v9 = vpop.permute.xlu0 %753 }
 0x2ba   : > { %2332 = vmatmul.msk.f32.vlgmr.msra.gmra.mxu3 %vm372_vm1, %v754_v9 }
 0x2c1   : > { %v756_v10 = vpop.permute.xlu0 %755 }
 0x2c2   : > { %2333 = vmatmul.msk.f32.gmra.mxu3 %vm372_vm1, %v756_v10 }
 0x2c9   : > { %v871_v30 = vpop.permute.xlu0 %870 }
 0x2d1   : > { %v572_v11 = vpop.xlane.xlu1 %571 }
 0x2d2   : > { %2566 = vrcp.f32 %v572_v11 }
 0x2d8   : > { %v2567_v12 = vpop.eup %2566 }
 0x2d9   : > { %v598_v13 = vmul.f32 %v2567_v12, %v2931_v34  ;;  %v575_v14 = vpop.xlane.xlu1 %574  ;;  %v749_v12 = vld [vmem:[#allocation2 + $0x60] sm:$0xff] }
 0x2da   : > { %2568 = vrcp.f32 %v575_v14 }
 0x2db   : > { %2324 = vmatmul.msk.f32.vlgmr.msra.gmra.mxu2 %vm515_vm2, %v598_v13 }
 0x2dc   : > { %2338 = vmatpush.xpose.msk.msra.mxu2 %vm372_vm1, %v838_v3 }
 0x2e0   : > { %v2569_v49 = vpop.eup %2568  ;;  %2339 = vmatpush.xpose.msk.msra.mxu2 %vm372_vm1, %v836_v51 }
 0x2e1   : > { %v584_v16 = vpop.xlane.xlu1 %583  ;;  %v599_v18 = vmul.f32 %v2569_v49, %v2936_v38  ;;  %v750_v49 = vld [vmem:[#allocation2 + $0x68] sm:$0xff] }
 0x2e2   : > { %2570 = vrcp.f32 %v584_v16 }
 0x2e3   : > { %2325 = vmatmul.msk.f32.gmra.mxu2 %vm515_vm2, %v599_v18 }
 0x2e8   : > { %v2571_v21 = vpop.eup %2570 }
 0x2e9   : > { %v602_v22 = vmul.f32 %v2571_v21, %v2941_v42  ;;  %v587_v25 = vpop.xlane.xlu1 %586 }
 0x2ea   : > { %2572 = vrcp.f32 %v587_v25 }
 0x2eb   : > { %2328 = vmatmul.msk.f32.vlgmr.msrb.gmra.mxu2 %vm515_vm2, %v602_v22 }
 0x2f0   : > { %v2573_v27 = vpop.eup %2572 }
 0x2f1   : > { %v603_v29 = vmul.f32 %v2573_v27, %v2945_v44 }
 0x2f3   : > { %2329 = vmatmul.msk.f32.gmra.mxu2 %vm515_vm2, %v603_v29 }
 0x2f4   : > { %v533_v31 = vpop.xlane.xlu0 %532 }
 0x2f5   : > { %v545_v39 = vsub.f32 %v2950_v47, %v533_v31 }
 0x2f7   : > { %v558_v41 = vmul.f32 1.442695, %v545_v39 }
 0x2fb   : > { %2340 = vmatmul.msk.f32.vlgmr.msra.gmra.mxu2 %vm372_vm1, %v832_v6 }
 0x301   : > { %v875_v32 = vpop.permute.xlu1 %874 }
 0x302   : > { %2343 = vmatpush.xpose.msk.msrb.mxu3 %vm372_vm1, %v875_v32 }
 0x303   : > { %2341 = vmatmul.msk.f32.gmra.mxu2 %vm372_vm1, %v834_v62 }
 0x305   : > { %2344 = vmatmul.msk.f32.vlgmr.msrb.gmra.mxu3 %vm372_vm1, %v871_v30 }
 0x307   : > { %v2485_v33 = vpop.permute.xlu0 %2484 }
 0x308   : > { %v2486_v34 = vunpack.i.l.bf16 %v2485_v33  ;;  %v2487_v35 = vunpack.i.h.bf16 %v2485_v33 }
 0x30a   : > { %700 = vmatpush.msrb.mxu1 %v2486_v34 }
 0x30c   : > { %701 = vmatpush.msrb.mxu1 %v2487_v35 }
 0x30d   : > { %2345 = vmatmul.msk.f32.gmra.mxu3 %vm372_vm1, %v873_v36 }
 0x31b   : > { %v3007_v58 = vpop.f32.mrf.mxu2 }
 0x323   : > { %v3013_v2 = vpop.f32.mrf.mxu2 }
 0x32c   : > { %v530_v37 = vpop.xlane.xlu1 %529 }
 0x32d   : > { %v544_v38 = vsub.f32 %v473_v7, %v530_v37  ;;  %v797_v7 = vpop.permute.xlu0 %796 }
 0x32f   : > { %v556_v40 = vmul.f32 1.442695, %v544_v38 }
 0x331   : > { %2574 = vpow2.f32 %v556_v40 }
 0x332   : > { %2576 = vpow2.f32 %v558_v41 }
 0x337   : > { %v2575_v42 = vpop.eup %2574 }
 0x338   : > { %v576_v43 = vsel %vm515_vm2, %v2575_v42, 0.0  ;;  %v2577_v44 = vpop.eup %2576 }
 0x339   : > { %577 = vadd.xlane.f32.xlu2 %v576_v43  ;;  %v579_v45 = vsel %vm515_vm2, %v2577_v44, 0.0 }
 0x33d   : > { %v2997_v46 = vpop.f32.mrf.mxu3 }
 0x341   : > { %580 = vadd.xlane.f32.xlu2 %v579_v45 }
 0x345   : > { %v2999_v47 = vpop.f32.mrf.mxu3 }
 0x359   : > { %798 = vrot.lane.b32.xlu2 %v2817_v19, %s2725_s24  ;;  %s3468_s24 = scalar_lea.vmem %s3506_s6, %s2295_s7 }
 0x35e   : > { %v3018_v6 = vpop.f32.mrf.mxu2 }
 0x361   : > { %794 = vrot.lane.b32.xlu2 %v2817_v19, %s2726_s25 }
 0x366   : > { %v3027_v8 = vpop.f32.mrf.mxu2 }
 0x36e   : > { %v3029_v9 = vpop.f32.mrf.mxu2 }
 0x376   : > { %v3031_v10 = vpop.f32.mrf.mxu2 }
 0x37e   : > { %v864_v11 = vpop.f32.mrf.mxu2 }
 0x37f   : > { %v865_v13 = vadd.f32 %v864_v11, %v749_v12 }
 0x381   : > { %v921_v14 = vsel %vm515_vm2, %v865_v13, -inf }
 0x386   : > { %v867_v16 = vpop.f32.mrf.mxu2 }
 0x387   : > { %v868_v18 = vadd.f32 %v867_v16, %v750_v49  ;;  %v747_v16 = vld [vmem:[#allocation2 + $0x50] sm:$0xff] }
 0x388   : > { %v903_v50 = vpop.f32.mrf.mxu3 }
 0x389   : > { %v904_v51 = vadd.f32 %v903_v50, %v751_v48  ;;  %v924_v21 = vsel %vm515_vm2, %v868_v18, -inf }
 0x38b   : > { %v927_v52 = vsel %vm515_vm2, %v904_v51, -inf }
 0x38c   : > { %928 = vmax.xlane.f32.xlu1 %v927_v52 }
 0x390   : > { %v906_v54 = vpop.f32.mrf.mxu3 }
 0x391   : > { %v907_v56 = vadd.f32 %v906_v54, %v752_v55 }
 0x393   : > { %v930_v57 = vsel %vm515_vm2, %v907_v56, -inf }
 0x394   : > { %931 = vmax.xlane.f32.xlu0 %v930_v57 }
 0x3a5   : > { %792 = vrot.lane.b32.xlu1 %v2820_v20, %s2726_s25 }
 0x3a8   : > { %1282 = vrot.lane.b32.xlu0 %v2811_v15, %s2727_s26 }
 0x3ac   : > { %v578_v59 = vpop.xlane.xlu2 %577 }
 0x3ad   : > { %2578 = vrcp.f32 %v578_v59  ;;  %2489 = vrot.lane.b32.xlu1 %v2958_v53, %s2728_s27 }
 0x3b0   : > { %1280 = vrot.lane.b32.xlu0 %v2814_v17, %s2727_s26 }
 0x3b3   : > { %v2579_v60 = vpop.eup %2578 }
 0x3b4   : > { %v600_v61 = vmul.f32 %v2579_v60, %v2575_v42  ;;  %v581_v62 = vpop.xlane.xlu2 %580 }
 0x3b5   : > { %2580 = vrcp.f32 %v581_v62  ;;  %2494 = vrot.lane.b32.xlu1 %v2895_v1, %s2728_s27 }
 0x3b6   : > { %2326 = vmatmul.msk.f32.vlgmr.msrb.gmra.mxu1 %vm515_vm2, %v600_v61 }
 0x3bb   : > { %v2581_v3 = vpop.eup %2580 }
 0x3bc   : > { %v799_v4 = vpop.permute.xlu2 %798  ;;  %v601_v5 = vmul.f32 %v2581_v3, %v2577_v44 }
 0x3bd   : > { %1360 = vrot.lane.b32.xlu1 %v2823_v23, %s2727_s26  ;;  %2334 = vmatpush.xpose.msk.msra.mxu1 %vm372_vm1, %v799_v4 }
 0x3be   : > { %2327 = vmatmul.msk.f32.gmra.mxu1 %vm515_vm2, %v601_v5 }
 0x3c1   : > { %2335 = vmatpush.xpose.msk.msra.mxu1 %vm372_vm1, %v797_v7 }
 0x3c4   : > { %v795_v38 = vpop.permute.xlu2 %794 }
 0x3c5   : > { %1321 = vrot.lane.b32.xlu1 %v2817_v19, %s2727_s26 }
 0x3ef   : > { %922 = vmax.xlane.f32.xlu1 %v921_v14 }
 0x3f7   : > { %925 = vmax.xlane.f32.xlu1 %v924_v21 }
 0x3ff   : > { %v929_v22 = vpop.xlane.xlu1 %928 }
 0x400   : > { %v939_v25 = vsub.f32 %v904_v51, %v929_v22 }
 0x402   : > { %v953_v27 = vmul.f32 1.442695, %v939_v25  ;;  %v748_v25 = vld [vmem:[#allocation2 + $0x58] sm:$0xff] }
 0x404   : > { %2582 = vpow2.f32 %v953_v27 }
 0x407   : > { %v932_v29 = vpop.xlane.xlu0 %931 }
 0x408   : > { %v940_v30 = vsub.f32 %v907_v56, %v932_v29 }
 0x40a   : > { %v2583_v31 = vpop.eup %2582  ;;  %v955_v32 = vmul.f32 1.442695, %v940_v30 }
 0x40b   : > { %v975_v33 = vsel %vm515_vm2, %v2583_v31, 0.0 }
 0x40c   : > { %2584 = vpow2.f32 %v955_v32  ;;  %976 = vadd.xlane.f32.xlu2 %v975_v33 }
 0x410   : > { %1319 = vrot.lane.b32.xlu1 %v2820_v20, %s2727_s26 }
 0x412   : > { %v2585_v34 = vpop.eup %2584 }
 0x413   : > { %v978_v35 = vsel %vm515_vm2, %v2585_v34, 0.0 }
 0x414   : > { %979 = vadd.xlane.f32.xlu0 %v978_v35 }
 0x417   : > { %v793_v36 = vpop.permute.xlu1 %792 }
 0x418   : > { %2336 = vmatmul.msk.f32.vlgmr.msra.gmra.mxu1 %vm372_vm1, %v793_v36  ;;  %1317 = vrot.lane.b32.xlu1 %v2817_v19, %s2729_s28 }
 0x41a   : > { %v1283_v37 = vpop.permute.xlu0 %1282 }
 0x41f   : > { %v2490_v39 = vpop.permute.xlu1 %2489 }
 0x420   : > { %v2491_v40 = vunpack.i.l.bf16 %v2490_v39  ;;  %2337 = vmatmul.msk.f32.gmra.mxu1 %vm372_vm1, %v795_v38  ;;  %v2492_v41 = vunpack.i.h.bf16 %v2490_v39 }
 0x422   : > { %1093 = vmatpush.msrb.mxu2 %v2491_v40  ;;  %v1281_v43 = vpop.permute.xlu0 %1280 }
 0x424   : > { %1276 = vrot.lane.b32.xlu2 %v2814_v17, %s2729_s28  ;;  %1094 = vmatpush.msrb.mxu2 %v2492_v41 }
 0x426   : > { %2370 = vmatpush.xpose.msk.msra.mxu2 %vm372_vm1, %v1283_v37 }
 0x427   : > { %v2495_v42 = vpop.permute.xlu1 %2494 }
 0x428   : > { %v2496_v44 = vunpack.i.l.bf16 %v2495_v42  ;;  %1356 = vrot.lane.b32.xlu0 %v2823_v23, %s2729_s28  ;;  %v2497_v45 = vunpack.i.h.bf16 %v2495_v42 }
 0x42a   : > { %2371 = vmatpush.xpose.msk.msra.mxu2 %vm372_vm1, %v1281_v43  ;;  %1128 = vmatpush.msra.mxu3 %v2496_v44 }
 0x42c   : > { %1129 = vmatpush.msra.mxu3 %v2497_v45  ;;  %1278 = vrot.lane.b32.xlu2 %v2811_v15, %s2729_s28 }
 0x42f   : > { %v1361_v48 = vpop.permute.xlu1 %1360 }
 0x430   : > { %1395 = vrot.lane.b32.xlu0 %v2832_v28, %s2729_s28 }
 0x433   : > { %v3071_v14 = vpop.f32.mrf.mxu1 }
 0x434   : > { %1358 = vrot.lane.b32.xlu2 %v2826_v24, %s2727_s26 }
 0x437   : > { %v1322_v50 = vpop.permute.xlu1 %1321 }
 0x438   : > { %2374 = vmatpush.xpose.msk.msrb.mxu3 %vm372_vm1, %v1322_v50 }
 0x43b   : > { %v3073_v49 = vpop.f32.mrf.mxu1 }
 0x462   : > { %v923_v51 = vpop.xlane.xlu1 %922 }
 0x463   : > { %v937_v52 = vsub.f32 %v865_v13, %v923_v51 }
 0x465   : > { %v949_v55 = vmul.f32 1.442695, %v937_v52 }
 0x467   : > { %2586 = vpow2.f32 %v949_v55 }
 0x46a   : > { %v926_v54 = vpop.xlane.xlu1 %925 }
 0x46b   : > { %v938_v56 = vsub.f32 %v868_v18, %v926_v54 }
 0x46d   : > { %v2587_v57 = vpop.eup %2586  ;;  %v951_v59 = vmul.f32 1.442695, %v938_v56 }
 0x46e   : > { %v969_v60 = vsel %vm515_vm2, %v2587_v57, 0.0 }
 0x46f   : > { %2588 = vpow2.f32 %v951_v59  ;;  %970 = vadd.xlane.f32.xlu2 %v969_v60 }
 0x475   : > { %v2589_v61 = vpop.eup %2588 }
 0x476   : > { %v972_v62 = vsel %vm515_vm2, %v2589_v61, 0.0 }
 0x477   : > { %973 = vadd.xlane.f32.xlu1 %v972_v62 }
 0x47f   : > { %v977_v3 = vpop.xlane.xlu2 %976 }
 0x480   : > { %2590 = vrcp.f32 %v977_v3 }
 0x482   : > { %v1320_v4 = vpop.permute.xlu1 %1319 }
 0x483   : > { %2375 = vmatpush.xpose.msk.msrb.mxu3 %vm372_vm1, %v1320_v4 }
 0x486   : > { %v2591_v5 = vpop.eup %2590 }
 0x487   : > { %v995_v7 = vmul.f32 %v2591_v5, %v2583_v31  ;;  %v980_v11 = vpop.xlane.xlu0 %979  ;;  %1354 = vrot.lane.b32.xlu2 %v2826_v24, %s2729_s28  ;;  %v1277_v30 = vpop.permute.xlu2 %1276 }
 0x488   : > { %2592 = vrcp.f32 %v980_v11 }
 0x489   : > { %2352 = vmatmul.msk.f32.vlgmr.msra.gmra.mxu3 %vm515_vm2, %v995_v7 }
 0x48e   : > { %v2593_v12 = vpop.eup %2592 }
 0x48f   : > { %1315 = vrot.lane.b32.xlu2 %v2820_v20, %s2729_s28  ;;  %v996_v13 = vmul.f32 %v2593_v12, %v2585_v34  ;;  %v1279_v32 = vpop.permute.xlu2 %1278  ;;  %v1318_v34 = vpop.permute.xlu1 %1317  ;;  %v1270_v12 = vld [vmem:[#allocation2 + $0x90] sm:$0xff] }
 0x490   : > { %1397 = vrot.lane.b32.xlu1 %v2828_v26, %s2727_s26 }
 0x491   : > { %2353 = vmatmul.msk.f32.gmra.mxu3 %vm515_vm2, %v996_v13 }
 0x495   : > { %v825_v18 = vpop.f32.mrf.mxu1 }
 0x496   : > { %v826_v21 = vadd.f32 %v825_v18, %v747_v16 }
 0x497   : > { %1399 = vrot.lane.b32.xlu2 %v2832_v28, %s2727_s26  ;;  %v1359_v33 = vpop.permute.xlu2 %1358 }
 0x498   : > { %v915_v22 = vsel %vm515_vm2, %v826_v21, -inf }
 0x49a   : > { %v1357_v45 = vpop.permute.xlu0 %1356 }
 0x49d   : > { %v828_v27 = vpop.f32.mrf.mxu1 }
 0x49e   : > { %v829_v29 = vadd.f32 %v828_v27, %v748_v25 }
 0x49f   : > { %1393 = vrot.lane.b32.xlu2 %v2828_v26, %s2729_s28 }
 0x4a0   : > { %v918_v31 = vsel %vm515_vm2, %v829_v29, -inf }
 0x4a2   : > { %v1396_v50 = vpop.permute.xlu0 %1395 }
 0x4ba   : > { %916 = vmax.xlane.f32.xlu1 %v915_v22 }
 0x4c8   : > { %919 = vmax.xlane.f32.xlu2 %v918_v31 }
 0x4e0   : > { %2499 = vrot.lane.b32.xlu2 %v2889_v0, %s2728_s27 }
 0x4e2   : > { %v971_v35 = vpop.xlane.xlu2 %970 }
 0x4e3   : > { %2594 = vrcp.f32 %v971_v35 }
 0x4e9   : > { %v2595_v36 = vpop.eup %2594 }
 0x4ea   : > { %v993_v37 = vmul.f32 %v2595_v36, %v2587_v57  ;;  %v1355_v38 = vpop.permute.xlu2 %1354  ;;  %v974_v39 = vpop.xlane.xlu1 %973 }
 0x4eb   : > { %2596 = vrcp.f32 %v974_v39 }
 0x4ec   : > { %2350 = vmatmul.msk.f32.vlgmr.msrb.gmra.mxu2 %vm515_vm2, %v993_v37  ;;  %v354_v37 = vld [vmem:[%s3504_s4] sm:$0xff] }
 0x4ed   : > { %2378 = vmatpush.xpose.msk.msrb.mxu2 %vm372_vm1, %v1361_v48 }
 0x4f1   : > { %v2597_v40 = vpop.eup %2596  ;;  %2379 = vmatpush.xpose.msk.msrb.mxu2 %vm372_vm1, %v1359_v33  ;;  %v1275_v33 = vld [vmem:[#allocation2 + $0xb8] sm:$0xff] }
 0x4f2   : > { %v1316_v41 = vpop.permute.xlu2 %1315  ;;  %v994_v42 = vmul.f32 %v2597_v40, %v2589_v61 }
 0x4f3   : > { %2376 = vmatmul.msk.f32.vlgmr.msrb.gmra.mxu3 %vm372_vm1, %v1316_v41 }
 0x4f4   : > { %2351 = vmatmul.msk.f32.gmra.mxu2 %vm515_vm2, %v994_v42 }
 0x4fa   : > { %v1400_v43 = vpop.permute.xlu2 %1399 }
 0x4fb   : > { %2377 = vmatmul.msk.f32.gmra.mxu3 %vm372_vm1, %v1318_v34 }
 0x4fc   : > { %2382 = vmatpush.xpose.msk.msra.mxu3 %vm372_vm1, %v1400_v43  ;;  %2372 = vmatmul.msk.f32.vlgmr.msra.gmra.mxu2 %vm372_vm1, %v1277_v30 }
 0x502   : > { %v1398_v44 = vpop.permute.xlu1 %1397  ;;  %v1394_v48 = vpop.permute.xlu2 %1393 }
 0x503   : > { %2383 = vmatpush.xpose.msk.msra.mxu3 %vm372_vm1, %v1398_v44 }
 0x504   : > { %2373 = vmatmul.msk.f32.gmra.mxu2 %vm372_vm1, %v1279_v32 }
 0x506   : > { %2384 = vmatmul.msk.f32.vlgmr.msra.gmra.mxu3 %vm372_vm1, %v1394_v48 }
 0x50c   : > { %2380 = vmatmul.msk.f32.vlgmr.msrb.gmra.mxu2 %vm372_vm1, %v1355_v38  ;;  %v3095_v7 = vpop.f32.mrf.mxu3 }
 0x50e   : > { %2385 = vmatmul.msk.f32.gmra.mxu3 %vm372_vm1, %v1396_v50 }
 0x514   : > { %2381 = vmatmul.msk.f32.gmra.mxu2 %vm372_vm1, %v1357_v45  ;;  %v3097_v11 = vpop.f32.mrf.mxu3 }
 0x52d   : > { %v917_v51 = vpop.xlane.xlu1 %916 }
 0x52e   : > { %v935_v52 = vsub.f32 %v826_v21, %v917_v51  ;;  %v1271_v21 = vld [vmem:[#allocation2 + $0x98] sm:$0xff] }
 0x530   : > { %v945_v55 = vmul.f32 1.442695, %v935_v52  ;;  %v1272_v52 = vld [vmem:[#allocation2 + $0xa0] sm:$0xff] }
 0x532   : > { %2598 = vpow2.f32 %v945_v55 }
 0x538   : > { %v2599_v54 = vpop.eup %2598 }
 0x539   : > { %v963_v56 = vsel %vm515_vm2, %v2599_v54, 0.0 }
 0x53a   : > { %964 = vadd.xlane.f32.xlu0 %v963_v56  ;;  %v1273_v56 = vld [vmem:[#allocation2 + $0xa8] sm:$0xff] }
 0x53b   : > { %v920_v57 = vpop.xlane.xlu2 %919 }
 0x53c   : > { %v936_v59 = vsub.f32 %v829_v29, %v920_v57  ;;  %v1274_v29 = vld [vmem:[#allocation2 + $0xb0] sm:$0xff] }
 0x53e   : > { %v947_v60 = vmul.f32 1.442695, %v936_v59 }
 0x540   : > { %2600 = vpow2.f32 %v947_v60 }
 0x543   : > { %v2500_v61 = vpop.permute.xlu2 %2499 }
 0x544   : > { %v2501_v62 = vunpack.i.l.bf16 %v2500_v61  ;;  %v2502_v4 = vunpack.i.h.bf16 %v2500_v61 }
 0x546   : > { %v2601_v3 = vpop.eup %2600  ;;  %1058 = vmatpush.msrb.mxu1 %v2501_v62 }
 0x547   : > { %v966_v5 = vsel %vm515_vm2, %v2601_v3, 0.0 }
 0x548   : > { %1059 = vmatpush.msrb.mxu1 %v2502_v4  ;;  %967 = vadd.xlane.f32.xlu0 %v966_v5  ;;  %v1269_v5 = vld [vmem:[#allocation2 + $0x88] sm:$0xff] }
 0x54a   : > { %1241 = vmatpush.msra.mxu1 %v354_v37 }
 0x56f   : > { %v3117_v38 = vpop.f32.mrf.mxu2 }
 0x576   : > { %v1348_v13 = vpop.f32.mrf.mxu3 }
 0x577   : > { %v1349_v16 = vadd.f32 %v1348_v13, %v1270_v12  ;;  %v3125_v40 = vpop.f32.mrf.mxu2 }
 0x579   : > { %v1438_v18 = vsel %vm515_vm2, %v1349_v16, -inf }
 0x57a   : > { %1439 = vmax.xlane.f32.xlu1 %v1438_v18 }
 0x57e   : > { %v1351_v22 = vpop.f32.mrf.mxu3 }
 0x57f   : > { %v3100_v25 = vadd.f32 %v1351_v22, %v1271_v21  ;;  %v1309_v44 = vpop.f32.mrf.mxu2 }
 0x581   : > { %v1441_v27 = vsel %vm515_vm2, %v3100_v25, -inf }
 0x582   : > { %1442 = vmax.xlane.f32.xlu1 %v1441_v27 }
 0x587   : > { %v1312_v50 = vpop.f32.mrf.mxu2 }
 0x588   : > { %v3162_v13 = vadd.f32 %v1312_v50, %v1269_v5 }
 0x589   : > { %v1426_v30 = vpop.f32.mrf.mxu3 }
 0x58a   : > { %v3104_v31 = vadd.f32 %v1426_v30, %v1274_v29 }
 0x58c   : > { %v1450_v32 = vsel %vm515_vm2, %v3104_v31, -inf }
 0x58d   : > { %1451 = vmax.xlane.f32.xlu2 %v1450_v32 }
 0x58f   : > { %v1387_v51 = vpop.f32.mrf.mxu2 }
 0x590   : > { %v3133_v55 = vadd.f32 %v1387_v51, %v1272_v52  ;;  %v745_v52 = vld [vmem:[#allocation2 + $0x40] sm:$0xff] }
 0x591   : > { %v1429_v34 = vpop.f32.mrf.mxu3 }
 0x592   : > { %v3108_v35 = vadd.f32 %v1429_v34, %v1275_v33 }
 0x594   : > { %v1453_v36 = vsel %vm515_vm2, %v3108_v35, -inf }
 0x595   : > { %1454 = vmax.xlane.f32.xlu0 %v1453_v36 }
 0x597   : > { %v1390_v57 = vpop.f32.mrf.mxu2 }
 0x598   : > { %v3139_v59 = vadd.f32 %v1390_v57, %v1273_v56 }
 0x5a5   : > { %1748 = vrot.lane.b32.xlu2 %v2811_v15, %s2730_s29 }
 0x5a9   : > { %2504 = vrot.lane.b32.xlu0 %v2883_v63, %s2731_s10 }
 0x5ad   : > { %1742 = vrot.lane.b32.xlu2 %v2814_v17, %s2732_s11  ;;  %v965_v39 = vpop.xlane.xlu0 %964 }
 0x5ae   : > { %2602 = vrcp.f32 %v965_v39 }
 0x5b1   : > { %2509 = vrot.lane.b32.xlu0 %v2958_v53, %s2731_s10 }
 0x5b4   : > { %v2603_v41 = vpop.eup %2602 }
 0x5b5   : > { %v991_v42 = vmul.f32 %v2603_v41, %v2599_v54  ;;  %v1444_v54 = vsel %vm515_vm2, %v3133_v55, -inf }
 0x5b7   : > { %2348 = vmatmul.msk.f32.vlgmr.msrb.gmra.mxu1 %vm515_vm2, %v991_v42 }
 0x5bb   : > { %v968_v43 = vpop.xlane.xlu0 %967 }
 0x5bc   : > { %2604 = vrcp.f32 %v968_v43 }
 0x5c2   : > { %v2605_v45 = vpop.eup %2604 }
 0x5c3   : > { %v992_v48 = vmul.f32 %v2605_v45, %v2601_v3  ;;  %v1268_v3 = vld [vmem:[#allocation2 + $0x80] sm:$0xff] }
 0x5c5   : > { %2349 = vmatmul.msk.f32.gmra.mxu1 %vm515_vm2, %v992_v48 }
 0x5cd   : > { %2362 = vmatmul.msk.f32.vlgmr.msra.gmra.mxu1 %vm372_vm1, %v3007_v58  ;;  %v1447_v58 = vsel %vm515_vm2, %v3139_v59, -inf }
 0x5d5   : > { %2363 = vmatmul.msk.f32.gmra.mxu1 %vm372_vm1, %v3013_v2 }
 0x5db   : > { %1445 = vmax.xlane.f32.xlu0 %v1444_v54 }
 0x5dd   : > { %2364 = vmatmul.msk.f32.gmra.mxu1 %vm372_vm1, %v3018_v6 }
 0x5e3   : > { %1448 = vmax.xlane.f32.xlu0 %v1447_v58 }
 0x5e5   : > { %2365 = vmatmul.msk.f32.gmra.mxu1 %vm372_vm1, %v3027_v8  ;;  %v3155_v8 = vadd.f32 %v1309_v44, %v1268_v3 }
 0x5ed   : > { %2366 = vmatmul.msk.f32.gmra.mxu1 %vm372_vm1, %v3071_v14  ;;  %v1440_v2 = vpop.xlane.xlu1 %1439 }
 0x5ee   : > { %v1458_v60 = vsub.f32 %v1349_v16, %v1440_v2  ;;  %v3223_v2 = vadd.f32 %v2997_v46, %v745_v52 }
 0x5f0   : > { %v1468_v61 = vmul.f32 1.442695, %v1458_v60 }
 0x5f2   : > { %2606 = vpow2.f32 %v1468_v61 }
 0x5f5   : > { %2367 = vmatmul.msk.f32.gmra.mxu1 %vm372_vm1, %v3073_v49  ;;  %v1432_v49 = vsel %vm515_vm2, %v3155_v8, -inf  ;;  %v1443_v21 = vpop.xlane.xlu1 %1442 }
 0x5f6   : > { %v1459_v27 = vsub.f32 %v3100_v25, %v1443_v21 }
 0x5f7   : > { %2514 = vrot.lane.b32.xlu0 %v2889_v0, %s2731_s10 }
 0x5f8   : > { %v3151_v6 = vpop.eup %2606  ;;  %v1470_v29 = vmul.f32 1.442695, %v1459_v27 }
 0x5f9   : > { %v1486_v62 = vsel %vm515_vm2, %v3151_v6, 0.0 }
 0x5fa   : > { %1487 = vadd.xlane.f32.xlu1 %v1486_v62 }
 0x5fd   : > { %2368 = vmatmul.msk.f32.gmra.mxu1 %vm372_vm1, %v3029_v9  ;;  %v1435_v9 = vsel %vm515_vm2, %v3162_v13, -inf }
 0x600   : > { %v1452_v14 = vpop.xlane.xlu2 %1451 }
 0x601   : > { %v1462_v4 = vsub.f32 %v3104_v31, %v1452_v14 }
 0x602   : > { %1433 = vmax.xlane.f32.xlu1 %v1432_v49 }
 0x603   : > { %v1476_v12 = vmul.f32 1.442695, %v1462_v4 }
 0x605   : > { %2608 = vpow2.f32 %v1476_v12  ;;  %2369 = vmatmul.msk.f32.gmra.mxu1 %vm372_vm1, %v3031_v10 }
 0x606   : > { %2610 = vpow2.f32 %v1470_v29 }
 0x608   : > { %v1749_v16 = vpop.permute.xlu2 %1748  ;;  %v3174_v30 = vpop.xlane.xlu0 %1454 }
 0x609   : > { %2402 = vmatpush.xpose.msk.msrb.mxu1 %vm372_vm1, %v1749_v16 }
 0x60a   : > { %1436 = vmax.xlane.f32.xlu1 %v1435_v9 }
 0x60b   : > { %v3169_v18 = vpop.eup %2608 }
 0x60c   : > { %v1498_v22 = vsel %vm515_vm2, %v3169_v18, 0.0  ;;  %v3176_v32 = vpop.eup %2610 }
 0x60d   : > { %1499 = vadd.xlane.f32.xlu2 %v1498_v22  ;;  %v1489_v34 = vsel %vm515_vm2, %v3176_v32, 0.0 }
 0x610   : > { %v1743_v48 = vpop.permute.xlu2 %1742 }
 0x61b   : > { %v2505_v10 = vpop.permute.xlu0 %2504 }
 0x61c   : > { %v2506_v31 = vunpack.i.l.bf16 %v2505_v10  ;;  %v2507_v33 = vunpack.i.h.bf16 %v2505_v10 }
 0x61e   : > { %1546 = vmatpush.msra.mxu2 %v2506_v31 }
 0x620   : > { %1547 = vmatpush.msra.mxu2 %v2507_v33 }
 0x621   : > { %1490 = vadd.xlane.f32.xlu0 %v1489_v34 }
 0x623   : > { %v2510_v36 = vpop.permute.xlu0 %2509  ;;  %1746 = vrot.lane.b32.xlu1 %v2814_v17, %s2730_s29  ;;  %v746_v17 = vld [vmem:[#allocation2 + $0x48] sm:$0xff] }
 0x624   : > { %v2511_v25 = vunpack.i.l.bf16 %v2510_v36  ;;  %v2512_v37 = vunpack.i.h.bf16 %v2510_v36  ;;  %v3205_v39 = vadd.f32 %v2999_v47, %v746_v17  ;;  %v1463_v17 = vsub.f32 %v3108_v35, %v3174_v30 }
 0x625   : > { %1826 = vrot.lane.b32.xlu2 %v2823_v23, %s2730_s29 }
 0x626   : > { %1616 = vmatpush.msrb.mxu2 %v2511_v25 }
 0x628   : > { %1617 = vmatpush.msrb.mxu2 %v2512_v37 }
 0x62b   : > { %1787 = vrot.lane.b32.xlu1 %v2817_v19, %s2730_s29 }
 0x62d   : > { %1865 = vrot.lane.b32.xlu2 %v2832_v28, %s2730_s29 }
 0x633   : > { %1785 = vrot.lane.b32.xlu1 %v2820_v20, %s2730_s29 }
 0x634   : > { %v3256_v31 = vpop.f32.mrf.mxu1 }
 0x635   : > { %1861 = vrot.lane.b32.xlu2 %v2832_v28, %s2732_s11  ;;  %1781 = vrot.lane.b32.xlu0 %v2820_v20, %s2732_s11 }
 0x63b   : > { %1744 = vrot.lane.b32.xlu1 %v2811_v15, %s2732_s11  ;;  %v912_v15 = vsel %vm515_vm2, %v3205_v39, -inf }
 0x63d   : > { %1783 = vrot.lane.b32.xlu0 %v2817_v19, %s2732_s11 }
 0x642   : > { %v3260_v34 = vpop.f32.mrf.mxu1 }
 0x645   : > { %1824 = vrot.lane.b32.xlu0 %v2826_v24, %s2730_s29 }
 0x64a   : > { %v3266_v25 = vpop.f32.mrf.mxu1 }
 0x64d   : > { %1820 = vrot.lane.b32.xlu0 %v2826_v24, %s2732_s11 }
 0x64e   : > { %v1446_v28 = vpop.xlane.xlu0 %1445 }
 0x64f   : > { %v1460_v56 = vsub.f32 %v3133_v55, %v1446_v28  ;;  %v1478_v28 = vmul.f32 1.442695, %v1463_v17 }
 0x651   : > { %v1472_v61 = vmul.f32 1.442695, %v1460_v56 }
 0x655   : > { %1822 = vrot.lane.b32.xlu0 %v2823_v23, %s2732_s11 }
 0x656   : > { %v1449_v19 = vpop.xlane.xlu0 %1448 }
 0x657   : > { %v1461_v55 = vsub.f32 %v3139_v59, %v1449_v19 }
 0x659   : > { %v1474_v46 = vmul.f32 1.442695, %v1461_v55 }
 0x65d   : > { %1863 = vrot.lane.b32.xlu0 %v2828_v26, %s2730_s29 }
 0x65e   : > { %913 = vmax.xlane.f32.xlu2 %v912_v15 }
 0x669   : > { %v2515_v20 = vpop.permute.xlu0 %2514 }
 0x66a   : > { %v2516_v41 = vunpack.i.l.bf16 %v2515_v20  ;;  %v2517_v42 = vunpack.i.h.bf16 %v2515_v20  ;;  %v3273_v20 = vpop.f32.mrf.mxu1 }
 0x66c   : > { %1581 = vmatpush.msrb.mxu3 %v2516_v41 }
 0x66d   : > { %v1488_v24 = vpop.xlane.xlu1 %1487 }
 0x66e   : > { %2612 = vrcp.f32 %v1488_v24  ;;  %1582 = vmatpush.msrb.mxu3 %v2517_v42 }
 0x674   : > { %v2613_v23 = vpop.eup %2612 }
 0x675   : > { %v1514_v43 = vmul.f32 %v2613_v23, %v3151_v6  ;;  %v1434_v47 = vpop.xlane.xlu1 %1433  ;;  %v909_v6 = vsel %vm515_vm2, %v3223_v2, -inf  ;;  %v3277_v23 = vpop.f32.mrf.mxu1 }
 0x676   : > { %v1456_v44 = vsub.f32 %v3155_v8, %v1434_v47  ;;  %2524 = vrot.lane.b32.xlu2 %v2883_v63, %s2728_s27 }
 0x677   : > { %2388 = vmatmul.msk.f32.vlgmr.msrb.gmra.mxu3 %vm515_vm2, %v1514_v43 }
 0x678   : > { %v1464_v45 = vmul.f32 1.442695, %v1456_v44 }
 0x67a   : > { %2614 = vpow2.f32 %v1464_v45 }
 0x67d   : > { %v1437_v50 = vpop.xlane.xlu1 %1436  ;;  %v3281_v35 = vpop.f32.mrf.mxu1 }
 0x67e   : > { %v1457_v51 = vsub.f32 %v3162_v13, %v1437_v50 }
 0x680   : > { %v3217_v54 = vpop.eup %2614  ;;  %v1466_v57 = vmul.f32 1.442695, %v1457_v51  ;;  %v3225_v60 = vpop.xlane.xlu2 %1499 }
 0x681   : > { %v1480_v58 = vsel %vm515_vm2, %v3217_v54, 0.0 }
 0x682   : > { %2616 = vpow2.f32 %v1466_v57  ;;  %1481 = vadd.xlane.f32.xlu1 %v1480_v58 }
 0x683   : > { %2618 = vpow2.f32 %v1472_v61 }
 0x684   : > { %2620 = vpow2.f32 %v1474_v46 }
 0x685   : > { %v3283_v30 = vpop.f32.mrf.mxu1 }
 0x687   : > { %910 = vmax.xlane.f32.xlu0 %v909_v6 }
 0x688   : > { %v3229_v62 = vpop.eup %2616  ;;  %v3234_v8 = vpop.permute.xlu2 %1826 }
 0x689   : > { %v1483_v3 = vsel %vm515_vm2, %v3229_v62, 0.0  ;;  %v3236_v14 = vpop.eup %2618 }
 0x68a   : > { %1484 = vadd.xlane.f32.xlu1 %v1483_v3  ;;  %v1492_v4 = vsel %vm515_vm2, %v3236_v14, 0.0  ;;  %v3240_v12 = vpop.eup %2620 }
 0x68b   : > { %v1495_v13 = vsel %vm515_vm2, %v3240_v12, 0.0 }
 0x68d   : > { %v3287_v45 = vpop.f32.mrf.mxu1 }
 0x690   : > { %v1866_v59 = vpop.permute.xlu2 %1865 }
 0x692   : > { %1493 = vadd.xlane.f32.xlu1 %v1492_v4 }
 0x694   : > { %v1491_v49 = vpop.xlane.xlu0 %1490 }
 0x695   : > { %2622 = vrcp.f32 %v1491_v49  ;;  %v1747_v5 = vpop.permute.xlu1 %1746  ;;  %v3292_v56 = vpop.f32.mrf.mxu1 }
 0x696   : > { %2403 = vmatpush.xpose.msk.msrb.mxu1 %vm372_vm1, %v1747_v5  ;;  %2624 = vpow2.f32 %v1478_v28  ;;  %v1734_v5 = vld [vmem:[#allocation2 + $0xc0] sm:$0xff] }
 0x698   : > { %v3268_v37 = vpop.permute.xlu2 %1861 }
 0x699   : > { %2404 = vmatmul.msk.f32.vlgmr.msrb.gmra.mxu1 %vm372_vm1, %v1743_v48 }
 0x69a   : > { %2414 = vmatpush.xpose.msk.msra.mxu1 %vm372_vm1, %v1866_v59  ;;  %1496 = vadd.xlane.f32.xlu1 %v1495_v13 }
 0x69b   : > { %v2623_v16 = vpop.eup %2622 }
 0x69c   : > { %v1515_v9 = vmul.f32 %v2623_v16, %v3176_v32  ;;  %v3275_v41 = vpop.eup %2624 }
 0x69d   : > { %v1788_v21 = vpop.permute.xlu1 %1787  ;;  %v1501_v43 = vsel %vm515_vm2, %v3275_v41, 0.0  ;;  %v3298_v55 = vpop.f32.mrf.mxu1 }
 0x69e   : > { %2389 = vmatmul.msk.f32.gmra.mxu3 %vm515_vm2, %v1515_v9 }
 0x6a5   : > { %v1786_v22 = vpop.permute.xlu1 %1785 }
 0x6a7   : > { %v3249_v27 = vpop.permute.xlu0 %1781 }
 0x6ad   : > { %v1745_v29 = vpop.permute.xlu1 %1744 }
 0x6ae   : > { %2405 = vmatmul.msk.f32.gmra.mxu1 %vm372_vm1, %v1745_v29 }
 0x6af   : > { %v3252_v10 = vpop.permute.xlu0 %1783 }
 0x6b3   : > { %2519 = vrot.lane.b32.xlu1 %v2895_v1, %s2731_s10 }
 0x6b7   : > { %v3258_v33 = vpop.permute.xlu0 %1824 }
 0x6bf   : > { %v3262_v32 = vpop.permute.xlu0 %1820 }
 0x6c7   : > { %v3264_v36 = vpop.permute.xlu0 %1822 }
 0x6cf   : > { %v1864_v15 = vpop.permute.xlu0 %1863 }
 0x6d0   : > { %2415 = vmatpush.xpose.msk.msra.mxu1 %vm372_vm1, %v1864_v15  ;;  %v1735_v15 = vld [vmem:[#allocation2 + $0xc8] sm:$0xff] }
 0x6d1   : > { %v914_v19 = vpop.xlane.xlu2 %913 }
 0x6d2   : > { %v934_v46 = vsub.f32 %v3205_v39, %v914_v19 }
 0x6d9   : > { %v2525_v42 = vpop.permute.xlu2 %2524 }
 0x6da   : > { %v2526_v24 = vunpack.i.l.bf16 %v2525_v42  ;;  %v2527_v47 = vunpack.i.h.bf16 %v2525_v42 }
 0x6dc   : > { %1023 = vmatpush.msrb.mxu0 %v2526_v24 }
 0x6dd   : > { %1502 = vadd.xlane.f32.xlu1 %v1501_v43 }
 0x6de   : > { %1024 = vmatpush.msrb.mxu0 %v2527_v47 }
 0x6f5   : > { %v1482_v44 = vpop.xlane.xlu1 %1481 }
 0x6f6   : > { %2626 = vrcp.f32 %v1482_v44  ;;  %1859 = vrot.lane.b32.xlu1 %v2828_v26, %s2732_s11 }
 0x6fa   : > { %v911_v26 = vpop.xlane.xlu0 %910 }
 0x6fb   : > { %v933_v3 = vsub.f32 %v3223_v2, %v911_v26  ;;  %v1738_v26 = vld [vmem:[#allocation2 + $0xe0] sm:$0xff] }
 0x6fc   : > { %v2627_v48 = vpop.eup %2626 }
 0x6fd   : > { %v1512_v50 = vmul.f32 %v2627_v48, %v3217_v54  ;;  %v1485_v51 = vpop.xlane.xlu1 %1484  ;;  %v941_v4 = vmul.f32 1.442695, %v933_v3 }
 0x6fe   : > { %2628 = vrcp.f32 %v1485_v51 }
 0x6ff   : > { %2386 = vmatmul.msk.f32.vlgmr.msra.gmra.mxu2 %vm515_vm2, %v1512_v50  ;;  %v3336_v50 = vpop.f32.mrf.mxu3 }
 0x700   : > { %2406 = vmatpush.xpose.msk.msra.mxu2 %vm372_vm1, %v1788_v21 }
 0x704   : > { %v2629_v52 = vpop.eup %2628  ;;  %2407 = vmatpush.xpose.msk.msra.mxu2 %vm372_vm1, %v1786_v22 }
 0x705   : > { %v1494_v57 = vpop.xlane.xlu1 %1493  ;;  %v1513_v58 = vmul.f32 %v2629_v52, %v3229_v62  ;;  %v943_v62 = vmul.f32 1.442695, %v934_v46 }
 0x706   : > { %2630 = vrcp.f32 %v1494_v57 }
 0x707   : > { %2387 = vmatmul.msk.f32.gmra.mxu2 %vm515_vm2, %v1513_v58 }
 0x70c   : > { %v2631_v61 = vpop.eup %2630 }
 0x70d   : > { %v1516_v54 = vmul.f32 %v2631_v61, %v3236_v14  ;;  %v1497_v6 = vpop.xlane.xlu1 %1496  ;;  %v1740_v61 = vld [vmem:[#allocation2 + $0xf0] sm:$0xff] }
 0x70e   : > { %2632 = vrcp.f32 %v1497_v6 }
 0x70f   : > { %2390 = vmatmul.msk.f32.vlgmr.msrb.gmra.mxu2 %vm515_vm2, %v1516_v54  ;;  %2634 = vpow2.f32 %v941_v4 }
 0x710   : > { %2636 = vpow2.f32 %v943_v62 }
 0x711   : > { %2638 = vrcp.f32 %v3225_v60 }
 0x714   : > { %v2633_v49 = vpop.eup %2632 }
 0x715   : > { %v1517_v59 = vmul.f32 %v2633_v49, %v3240_v12  ;;  %v2635_v14 = vpop.eup %2634 }
 0x716   : > { %v1775_v13 = vpop.f32.mrf.mxu1  ;;  %v2637_v9 = vpop.eup %2636  ;;  %v957_v39 = vsel %vm515_vm2, %v2635_v14, 0.0 }
 0x717   : > { %v3304_v16 = vadd.f32 %v1775_v13, %v1734_v5  ;;  %2391 = vmatmul.msk.f32.gmra.mxu2 %vm515_vm2, %v1517_v59  ;;  %v960_v12 = vsel %vm515_vm2, %v2637_v9, 0.0  ;;  %v2639_v22 = vpop.eup %2638  ;;  %v1739_v13 = vld [vmem:[#allocation2 + $0xe8] sm:$0xff] }
 0x718   : > { %v1518_v28 = vmul.f32 %v2639_v22, %v3169_v18 }
 0x719   : > { %v1898_v2 = vsel %vm515_vm2, %v3304_v16, -inf }
 0x71a   : > { %1899 = vmax.xlane.f32.xlu0 %v1898_v2  ;;  %v1741_v2 = vld [vmem:[#allocation2 + $0xf8] sm:$0xff] }
 0x71f   : > { %2408 = vmatmul.msk.f32.vlgmr.msra.gmra.mxu2 %vm372_vm1, %v3249_v27 }
 0x720   : > { %958 = vadd.xlane.f32.xlu1 %v957_v39 }
 0x722   : > { %961 = vadd.xlane.f32.xlu0 %v960_v12 }
 0x725   : > { %v2520_v21 = vpop.permute.xlu1 %2519 }
 0x726   : > { %v2521_v29 = vunpack.i.l.bf16 %v2520_v21  ;;  %v2522_v17 = vunpack.i.h.bf16 %v2520_v21 }
 0x727   : > { %2409 = vmatmul.msk.f32.gmra.mxu2 %vm372_vm1, %v3252_v10 }
 0x728   : > { %1651 = vmatpush.msra.mxu3 %v2521_v29 }
 0x72a   : > { %1652 = vmatpush.msra.mxu3 %v2522_v17  ;;  %v1737_v17 = vld [vmem:[#allocation2 + $0xd8] sm:$0xff] }
 0x72b   : > { %2392 = vmatmul.msk.f32.vlgmr.msra.gmra.mxu3 %vm515_vm2, %v1518_v28  ;;  %v1778_v27 = vpop.f32.mrf.mxu1 }
 0x72c   : > { %v1779_v60 = vadd.f32 %v1778_v27, %v1735_v15  ;;  %2410 = vmatpush.xpose.msk.msrb.mxu3 %vm372_vm1, %v3234_v8 }
 0x72e   : > { %v1901_v19 = vsel %vm515_vm2, %v1779_v60, -inf }
 0x72f   : > { %1902 = vmax.xlane.f32.xlu0 %v1901_v19 }
 0x730   : > { %2411 = vmatpush.xpose.msk.msrb.mxu3 %vm372_vm1, %v3258_v33 }
 0x750   : > { %v1503_v10 = vpop.xlane.xlu1 %1502 }
 0x751   : > { %2640 = vrcp.f32 %v1503_v10 }
 0x757   : > { %v2641_v42 = vpop.eup %2640 }
 0x758   : > { %v1519_v18 = vmul.f32 %v2641_v42, %v3275_v41  ;;  %v1736_v42 = vld [vmem:[#allocation2 + $0xd0] sm:$0xff] }
 0x75a   : > { %2393 = vmatmul.msk.f32.gmra.mxu3 %vm515_vm2, %v1519_v18  ;;  %v355_v18 = vld [vmem:[%s3504_s4 + $0x8] sm:$0xff] }
 0x75b   : > { %1176 = vmatpush.msra.mxu0 %v355_v18 }
 0x762   : > { %2412 = vmatmul.msk.f32.vlgmr.msrb.gmra.mxu3 %vm372_vm1, %v3262_v32 }
 0x768   : > { %v1860_v24 = vpop.permute.xlu1 %1859 }
 0x769   : > { %2416 = vmatmul.msk.f32.vlgmr.msra.gmra.mxu1 %vm372_vm1, %v1860_v24 }
 0x76a   : > { %2413 = vmatmul.msk.f32.gmra.mxu3 %vm372_vm1, %v3264_v36 }
 0x771   : > { %2417 = vmatmul.msk.f32.gmra.mxu1 %vm372_vm1, %v3268_v37  ;;  %v3340_v37 = vpop.f32.mrf.mxu3 }
 0x782   : > { %v3334_v48 = vpop.f32.mrf.mxu2 }
 0x78a   : > { %v3338_v36 = vpop.f32.mrf.mxu2 }
 0x78d   : > { %v1900_v8 = vpop.xlane.xlu0 %1899 }
 0x78e   : > { %v1922_v46 = vsub.f32 %v3304_v16, %v1900_v8 }
 0x790   : > { %v1930_v59 = vmul.f32 1.442695, %v1922_v46 }
 0x792   : > { %v3342_v51 = vpop.f32.mrf.mxu2 }
 0x793   : > { %v959_v33 = vpop.xlane.xlu1 %958 }
 0x794   : > { %2642 = vrcp.f32 %v959_v33 }
 0x795   : > { %v962_v43 = vpop.xlane.xlu0 %961 }
 0x796   : > { %2644 = vrcp.f32 %v962_v43 }
 0x797   : > { %2646 = vpow2.f32 %v1930_v59 }
 0x79a   : > { %v2643_v47 = vpop.eup %2642  ;;  %v3348_v58 = vpop.f32.mrf.mxu2 }
 0x79b   : > { %v989_v41 = vmul.f32 %v2643_v47, %v2635_v14 }
 0x79c   : > { %v2645_v44 = vpop.eup %2644 }
 0x79d   : > { %2346 = vmatmul.msk.f32.vlgmr.msrb.gmra.mxu0 %vm515_vm2, %v989_v41  ;;  %v990_v32 = vmul.f32 %v2645_v44, %v2637_v9  ;;  %v3364_v27 = vpop.eup %2646  ;;  %v356_v44 = vld [vmem:[%s3504_s4 + $0x10] sm:$0xff] }
 0x79e   : > { %v1946_v10 = vsel %vm515_vm2, %v3364_v27, 0.0  ;;  %1699 = vmatpush.msrb.mxu0 %v356_v44  ;;  %v357_v44 = vld [vmem:[%s3504_s4 + $0x18] sm:$0xff] }
 0x7a2   : > { %v1814_v49 = vpop.f32.mrf.mxu2  ;;  %v1903_v14 = vpop.xlane.xlu0 %1902 }
 0x7a3   : > { %v1923_v21 = vsub.f32 %v1779_v60, %v1903_v14  ;;  %v1815_v24 = vadd.f32 %v1814_v49, %v1736_v42 }
 0x7a5   : > { %2347 = vmatmul.msk.f32.gmra.mxu0 %vm515_vm2, %v990_v32  ;;  %v1932_v15 = vmul.f32 1.442695, %v1923_v21  ;;  %v1904_v33 = vsel %vm515_vm2, %v1815_v24, -inf }
 0x7a7   : > { %2648 = vpow2.f32 %v1932_v15 }
 0x7aa   : > { %v1817_v28 = vpop.f32.mrf.mxu2 }
 0x7ab   : > { %v1818_v19 = vadd.f32 %v1817_v28, %v1737_v17 }
 0x7ad   : > { %v1907_v60 = vsel %vm515_vm2, %v1818_v19, -inf  ;;  %v3372_v8 = vpop.eup %2648 }
 0x7ae   : > { %v3344_v52 = vpop.f32.mrf.mxu3  ;;  %v1949_v43 = vsel %vm515_vm2, %v3372_v8, 0.0 }
 0x7dd   : > { %v3346_v57 = vpop.f32.mrf.mxu3 }
 0x7e5   : > { %v1853_v54 = vpop.f32.mrf.mxu3 }
 0x7e6   : > { %v1854_v6 = vadd.f32 %v1853_v54, %v1738_v26  ;;  %v1892_v3 = vpop.f32.mrf.mxu1 }
 0x7e7   : > { %v3351_v4 = vadd.f32 %v1892_v3, %v1740_v61 }
 0x7e8   : > { %v1910_v62 = vsel %vm515_vm2, %v1854_v6, -inf }
 0x7e9   : > { %1911 = vmax.xlane.f32.xlu2 %v1910_v62  ;;  %v1916_v5 = vsel %vm515_vm2, %v3351_v4, -inf }
 0x7ea   : > { %1917 = vmax.xlane.f32.xlu0 %v1916_v5 }
 0x7ed   : > { %v1856_v9 = vpop.f32.mrf.mxu3 }
 0x7ee   : > { %v3356_v39 = vadd.f32 %v1856_v9, %v1739_v13  ;;  %v1895_v12 = vpop.f32.mrf.mxu1 }
 0x7ef   : > { %v3358_v16 = vadd.f32 %v1895_v12, %v1741_v2 }
 0x7f0   : > { %v1913_v22 = vsel %vm515_vm2, %v3356_v39, -inf }
 0x7f1   : > { %1914 = vmax.xlane.f32.xlu1 %v1913_v22  ;;  %v1919_v29 = vsel %vm515_vm2, %v3358_v16, -inf }
 0x7f2   : > { %1920 = vmax.xlane.f32.xlu0 %v1919_v29 }
 0x7f9   : > { %1947 = vadd.xlane.f32.xlu1 %v1946_v10 }
 0x7fa   : > { %1908 = vmax.xlane.f32.xlu0 %v1907_v60 }
 0x801   : > { %1905 = vmax.xlane.f32.xlu1 %v1904_v33 }
 0x802   : > { %1950 = vadd.xlane.f32.xlu0 %v1949_v43 }
 0x81a   : > { %v1026_v47 = vpop.f32.mrf.mxu0  ;;  %2529 = vrot.lane.b32.xlu1 %v2883_v63, %s2733_s14 }
 0x81b   : > { %2354 = vmatmul.msk.f32.vlgmr.msra.gmra.mxu0 %vm372_vm1, %v1026_v47 }
 0x822   : > { %v1029_v41 = vpop.f32.mrf.mxu0 }
 0x823   : > { %2355 = vmatmul.msk.f32.gmra.mxu0 %vm372_vm1, %v1029_v41 }
 0x82b   : > { %2356 = vmatmul.msk.f32.gmra.mxu0 %vm372_vm1, %v3256_v31 }
 0x833   : > { %2357 = vmatmul.msk.f32.gmra.mxu0 %vm372_vm1, %v3260_v34 }
 0x83b   : > { %2358 = vmatmul.msk.f32.gmra.mxu0 %vm372_vm1, %v3117_v38 }
 0x843   : > { %2359 = vmatmul.msk.f32.gmra.mxu0 %vm372_vm1, %v3125_v40 }
 0x84b   : > { %2360 = vmatmul.msk.f32.gmra.mxu0 %vm372_vm1, %v3095_v7 }
 0x853   : > { %2361 = vmatmul.msk.f32.gmra.mxu0 %vm372_vm1, %v3097_v11 }
 0x85b   : > { %2394 = vmatmul.msk.f32.vlgmr.msrb.gmra.mxu0 %vm372_vm1, %v3334_v48 }
 0x85c   : > { %v1912_v63 = vpop.xlane.xlu2 %1911 }
 0x85d   : > { %v1926_v31 = vsub.f32 %v1854_v6, %v1912_v63  ;;  %v1918_v34 = vpop.xlane.xlu0 %1917 }
 0x85f   : > { %v1938_v32 = vmul.f32 1.442695, %v1926_v31 }
 0x861   : > { %2650 = vpow2.f32 %v1938_v32 }
 0x863   : > { %2395 = vmatmul.msk.f32.gmra.mxu0 %vm372_vm1, %v3338_v36 }
 0x864   : > { %v1915_v38 = vpop.xlane.xlu1 %1914 }
 0x865   : > { %v1921_v26 = vpop.xlane.xlu0 %1920  ;;  %v1927_v9 = vsub.f32 %v3356_v39, %v1915_v38 }
 0x867   : > { %v3400_v40 = vpop.eup %2650  ;;  %v1940_v12 = vmul.f32 1.442695, %v1927_v9 }
 0x868   : > { %v1958_v7 = vsel %vm515_vm2, %v3400_v40, 0.0 }
 0x869   : > { %1959 = vadd.xlane.f32.xlu1 %v1958_v7 }
 0x86b   : > { %2396 = vmatmul.msk.f32.gmra.mxu0 %vm372_vm1, %v3336_v50 }
 0x86c   : > { %v1948_v11 = vpop.xlane.xlu1 %1947 }
 0x86d   : > { %v1909_v48 = vpop.xlane.xlu0 %1908 }
 0x86e   : > { %v1925_v61 = vsub.f32 %v1818_v19, %v1909_v48 }
 0x870   : > { %v1936_v54 = vmul.f32 1.442695, %v1925_v61 }
 0x872   : > { %2652 = vpow2.f32 %v1936_v54 }
 0x873   : > { %2397 = vmatmul.msk.f32.gmra.mxu0 %vm372_vm1, %v3340_v37 }
 0x874   : > { %v1906_v36 = vpop.xlane.xlu1 %1905 }
 0x875   : > { %v1924_v6 = vsub.f32 %v1815_v24, %v1906_v36  ;;  %v1951_v37 = vpop.xlane.xlu0 %1950 }
 0x877   : > { %v1934_v3 = vmul.f32 1.442695, %v1924_v6 }
 0x878   : > { %v3408_v46 = vpop.eup %2652 }
 0x879   : > { %2654 = vpow2.f32 %v1934_v3  ;;  %v1955_v49 = vsel %vm515_vm2, %v3408_v46, 0.0 }
 0x87a   : > { %1956 = vadd.xlane.f32.xlu2 %v1955_v49  ;;  %2656 = vrcp.f32 %v1948_v11 }
 0x87b   : > { %2398 = vmatmul.msk.f32.gmra.mxu0 %vm372_vm1, %v3342_v51  ;;  %2658 = vrcp.f32 %v1951_v37 }
 0x87f   : > { %v3414_v50 = vpop.eup %2654 }
 0x880   : > { %v1952_v62 = vsel %vm515_vm2, %v3414_v50, 0.0  ;;  %v2657_v59 = vpop.eup %2656 }
 0x881   : > { %1953 = vadd.xlane.f32.xlu0 %v1952_v62  ;;  %v1978_v2 = vmul.f32 %v2657_v59, %v3364_v27 }
 0x882   : > { %2544 = vrot.lane.b32.xlu1 %v2895_v1, %s2733_s14  ;;  %v2659_v1 = vpop.eup %2658 }
 0x883   : > { %2399 = vmatmul.msk.f32.gmra.mxu0 %vm372_vm1, %v3348_v58  ;;  %v1928_v58 = vsub.f32 %v3351_v4, %v1918_v34 }
 0x885   : > { %v1942_v14 = vmul.f32 1.442695, %v1928_v58 }
 0x887   : > { %2660 = vpow2.f32 %v1942_v14 }
 0x888   : > { %2662 = vpow2.f32 %v1940_v12 }
 0x88b   : > { %2400 = vmatmul.msk.f32.gmra.mxu0 %vm372_vm1, %v3344_v52  ;;  %v1979_v52 = vmul.f32 %v2659_v1, %v3372_v8 }
 0x88c   : > { %v2530_v5 = vpop.permute.xlu1 %2529 }
 0x88d   : > { %v2531_v51 = vunpack.i.l.bf16 %v2530_v5  ;;  %v2532_v13 = vunpack.i.h.bf16 %v2530_v5  ;;  %v2661_v21 = vpop.eup %2660 }
 0x88e   : > { %v1964_v22 = vsel %vm515_vm2, %v2661_v21, 0.0  ;;  %v2663_v29 = vpop.eup %2662 }
 0x88f   : > { %2012 = vmatpush.msrb.mxu2 %v2531_v51 }
 0x891   : > { %2013 = vmatpush.msrb.mxu2 %v2532_v13 }
 0x892   : > { %2418 = vmatmul.msk.f32.vlgmr.msrb.gmra.mxu2 %vm515_vm2, %v1978_v2  ;;  %2539 = vrot.lane.b32.xlu2 %v2958_v53, %s2733_s14  ;;  %v1929_v53 = vsub.f32 %v3358_v16, %v1921_v26 }
 0x893   : > { %2401 = vmatmul.msk.f32.gmra.mxu0 %vm372_vm1, %v3346_v57 }
 0x894   : > { %v1944_v57 = vmul.f32 1.442695, %v1929_v53 }
 0x895   : > { %2534 = vrot.lane.b32.xlu0 %v2889_v0, %s2733_s14  ;;  %v1961_v0 = vsel %vm515_vm2, %v2663_v29, 0.0 }
 0x896   : > { %2664 = vpow2.f32 %v1944_v57 }
 0x898   : > { %v1178_v6 = vpop.f32.mrf.mxu0 }
 0x899   : > { %v1244_v2 = vadd.f32 %v3266_v25, %v1178_v6 }
 0x89a   : > { %2419 = vmatmul.msk.f32.gmra.mxu2 %vm515_vm2, %v1979_v52  ;;  %v2549_v52 = vld [vmem:[%s3505_s5] ss:$0 sm:$0xff] }
 0x89c   : > { %v2665_v17 = vpop.eup %2664 }
 0x89d   : > { %v1967_v4 = vsel %vm515_vm2, %v2665_v17, 0.0 }
 0x8a0   : > { %v1181_v3 = vpop.f32.mrf.mxu0 }
 0x8a1   : > { %v1247_v53 = vadd.f32 %v3273_v20, %v1181_v3 }
 0x8bb   : > { %1965 = vadd.xlane.f32.xlu2 %v1964_v22 }
 0x8bf   : > { %1962 = vadd.xlane.f32.xlu0 %v1961_v0 }
 0x8c7   : > { %1968 = vadd.xlane.f32.xlu0 %v1967_v4 }
 0x8dc   : > { %v1960_v39 = vpop.xlane.xlu1 %1959 }
 0x8dd   : > { %2666 = vrcp.f32 %v1960_v39 }
 0x8e3   : > { %v2667_v19 = vpop.eup %2666 }
 0x8e4   : > { %v1982_v18 = vmul.f32 %v2667_v19, %v3400_v40 }
 0x8ed   : > { %v1957_v28 = vpop.xlane.xlu2 %1956 }
 0x8f4   : > { %v2545_v15 = vpop.permute.xlu1 %2544  ;;  %v1954_v24 = vpop.xlane.xlu0 %1953 }
 0x8f5   : > { %v2546_v27 = vunpack.i.l.bf16 %v2545_v15  ;;  %v2540_v16 = vpop.permute.xlu2 %2539  ;;  %v2547_v42 = vunpack.i.h.bf16 %v2545_v15  ;;  %2668 = vrcp.f32 %v1954_v24 }
 0x8f6   : > { %v2541_v10 = vunpack.i.l.bf16 %v2540_v16  ;;  %v2542_v60 = vunpack.i.h.bf16 %v2540_v16  ;;  %2670 = vrcp.f32 %v1957_v28 }
 0x8f7   : > { %2117 = vmatpush.msra.mxu2 %v2546_v27 }
 0x8f8   : > { %2082 = vmatpush.msrb.mxu1 %v2541_v10 }
 0x8f9   : > { %2118 = vmatpush.msra.mxu2 %v2547_v42 }
 0x8fa   : > { %2083 = vmatpush.msrb.mxu1 %v2542_v60 }
 0x8fb   : > { %2422 = vmatmul.msk.f32.vlgmr.msrb.gmra.mxu1 %vm515_vm2, %v1982_v18  ;;  %v2669_v33 = vpop.eup %2668 }
 0x8fc   : > { %v1980_v41 = vmul.f32 %v2669_v33, %v3414_v50  ;;  %v2671_v63 = vpop.eup %2670 }
 0x8fd   : > { %v1981_v31 = vmul.f32 %v2671_v63, %v3408_v46  ;;  %v1184_v46 = vpop.f32.mrf.mxu0 }
 0x8fe   : > { %v1250_v39 = vadd.f32 %v3277_v23, %v1184_v46 }
 0x905   : > { %v1187_v49 = vpop.f32.mrf.mxu0 }
 0x906   : > { %v1253_v10 = vadd.f32 %v3281_v35, %v1187_v49 }
 0x907   : > { %v2535_v8 = vpop.permute.xlu0 %2534 }
 0x908   : > { %v2536_v43 = vunpack.i.l.bf16 %v2535_v8  ;;  %v2537_v47 = vunpack.i.h.bf16 %v2535_v8 }
 0x90a   : > { %2047 = vmatpush.msra.mxu3 %v2536_v43 }
 0x90c   : > { %2048 = vmatpush.msra.mxu3 %v2537_v47 }
 0x90d   : > { %2420 = vmatmul.msk.f32.vlgmr.msra.gmra.mxu3 %vm515_vm2, %v1980_v41  ;;  %v1190_v50 = vpop.f32.mrf.mxu0 }
 0x90e   : > { %2165 = vmatpush.msrb.mxu3 %v357_v44  ;;  %v1256_v33 = vadd.f32 %v3283_v30, %v1190_v50 }
 0x915   : > { %2421 = vmatmul.msk.f32.gmra.mxu3 %vm515_vm2, %v1981_v31  ;;  %v2015_v34 = vpop.f32.mrf.mxu2  ;;  %v1193_v62 = vpop.f32.mrf.mxu0 }
 0x916   : > { %v1259_v44 = vadd.f32 %v3287_v45, %v1193_v62 }
 0x91d   : > { %2426 = vmatmul.msk.f32.vlgmr.msrb.gmra.mxu3 %vm372_vm1, %v2015_v34  ;;  %v2018_v32 = vpop.f32.mrf.mxu2  ;;  %v1196_v37 = vpop.f32.mrf.mxu0 }
 0x91e   : > { %v1262_v30 = vadd.f32 %v3292_v56, %v1196_v37 }
 0x925   : > { %2427 = vmatmul.msk.f32.gmra.mxu3 %vm372_vm1, %v2018_v32  ;;  %v3454_v5 = vpop.f32.mrf.mxu0 }
 0x92d   : > { %v1701_v13 = vpop.f32.mrf.mxu0 }
 0x92e   : > { %v1966_v38 = vpop.xlane.xlu2 %1965  ;;  %v1725_v1 = vadd.f32 %v1701_v13, %v1244_v2 }
 0x92f   : > { %2672 = vrcp.f32 %v1966_v38 }
 0x932   : > { %v1963_v26 = vpop.xlane.xlu0 %1962 }
 0x933   : > { %2674 = vrcp.f32 %v1963_v26 }
 0x935   : > { %v2673_v40 = vpop.eup %2672  ;;  %v1704_v25 = vpop.f32.mrf.mxu0 }
 0x936   : > { %v1984_v7 = vmul.f32 %v2673_v40, %v2661_v21  ;;  %v1726_v21 = vadd.f32 %v1704_v25, %v1247_v53 }
 0x938   : > { %2424 = vmatmul.msk.f32.vlgmr.msra.gmra.mxu2 %vm515_vm2, %v1984_v7 }
 0x939   : > { %v2675_v11 = vpop.eup %2674 }
 0x93a   : > { %v1969_v48 = vpop.xlane.xlu0 %1968  ;;  %v1983_v61 = vmul.f32 %v2675_v11, %v2663_v29 }
 0x93b   : > { %2676 = vrcp.f32 %v1969_v48 }
 0x93c   : > { %2423 = vmatmul.msk.f32.gmra.mxu1 %vm515_vm2, %v1983_v61  ;;  %v1265_v61 = vadd.f32 %v3298_v55, %v3454_v5 }
 0x93d   : > { %v1707_v20 = vpop.f32.mrf.mxu0 }
 0x93e   : > { %v1727_v28 = vadd.f32 %v1707_v20, %v1250_v39 }
 0x941   : > { %v2677_v54 = vpop.eup %2676 }
 0x942   : > { %v1985_v36 = vmul.f32 %v2677_v54, %v2665_v17 }
 0x944   : > { %2425 = vmatmul.msk.f32.gmra.mxu2 %vm515_vm2, %v1985_v36 }
 0x945   : > { %v1710_v16 = vpop.f32.mrf.mxu0 }
 0x946   : > { %v1728_v42 = vadd.f32 %v1710_v16, %v1253_v10 }
 0x94d   : > { %v1713_v8 = vpop.f32.mrf.mxu0 }
 0x94e   : > { %v1729_v23 = vadd.f32 %v1713_v8, %v1256_v33 }
 0x955   : > { %v1716_v35 = vpop.f32.mrf.mxu0 }
 0x956   : > { %v1730_v63 = vadd.f32 %v1716_v35, %v1259_v44 }
 0x95d   : > { %v1719_v32 = vpop.f32.mrf.mxu0 }
 0x95e   : > { %v1731_v26 = vadd.f32 %v1719_v32, %v1262_v30 }
 0x965   : > { %v1722_v48 = vpop.f32.mrf.mxu0 }
 0x966   : > { %v1732_v45 = vadd.f32 %v1722_v48, %v1265_v61 }
 0x978   : > { %v2085_v58 = vpop.f32.mrf.mxu1 }
 0x990   : > { %v2050_v59 = vpop.f32.mrf.mxu3 }
 0x991   : > { %2428 = vmatmul.msk.f32.gmra.mxu3 %vm372_vm1, %v2050_v59 }
 0x998   : > { %v2053_v51 = vpop.f32.mrf.mxu3 }
 0x999   : > { %2429 = vmatmul.msk.f32.gmra.mxu3 %vm372_vm1, %v2053_v51 }
 0x9a0   : > { %v2167_v14 = vpop.f32.mrf.mxu3 }
 0x9a1   : > { %v2191_v9 = vadd.f32 %v2167_v14, %v1725_v1  ;;  %2430 = vmatmul.msk.f32.gmra.mxu3 %vm372_vm1, %v2085_v58 }
 0x9a3   : > { %v2203_v12 = vadd.f32 %v2549_v52, %v2191_v9 }
 0x9a5   : > { %2211 = vst.msk [vmem:[%s3468_s24] sm:$0xff] %vm288_vm0, %v2203_v12 }
 0x9a8   : > { %v2170_v57 = vpop.f32.mrf.mxu3 }
 0x9a9   : > { %v2192_v22 = vadd.f32 %v2170_v57, %v1726_v21 }
 0x9ab   : > { %v2204_v29 = vadd.f32 %v2549_v52, %v2192_v22 }
 0x9ad   : > { %2212 = vst.msk [vmem:[%s3468_s24 + $0x8] sm:$0xff] %vm288_vm0, %v2204_v29 }
 0x9b9   : > { %v2088_v0 = vpop.f32.mrf.mxu1 }
 0x9ba   : > { %2431 = vmatmul.msk.f32.gmra.mxu3 %vm372_vm1, %v2088_v0 }
 0x9bb   : > { %v2120_v17 = vpop.f32.mrf.mxu2 }
 0x9c2   : > { %2432 = vmatmul.msk.f32.gmra.mxu3 %vm372_vm1, %v2120_v17 }
 0x9c7   : > { %v2123_v4 = vpop.f32.mrf.mxu2 }
 0x9ca   : > { %2433 = vmatmul.msk.f32.gmra.mxu3 %vm372_vm1, %v2123_v4 }
 0xa14   : > { %v2173_v15 = vpop.f32.mrf.mxu3 }
 0xa15   : > { %v2193_v27 = vadd.f32 %v2173_v15, %v1727_v28 }
 0xa17   : > { %v2205_v19 = vadd.f32 %v2549_v52, %v2193_v27 }
 0xa19   : > { %2213 = vst.msk [vmem:[%s3468_s24 + $0x10] sm:$0xff] %vm288_vm0, %v2205_v19 }
 0xa1c   : > { %v2176_v60 = vpop.f32.mrf.mxu3 }
 0xa1d   : > { %v2194_v18 = vadd.f32 %v2176_v60, %v1728_v42 }
 0xa1f   : > { %v2206_v24 = vadd.f32 %v2549_v52, %v2194_v18 }
 0xa21   : > { %2214 = vst.msk [vmem:[%s3468_s24 + $0x18] sm:$0xff] %vm288_vm0, %v2206_v24 }
 0xa24   : > { %v2179_v43 = vpop.f32.mrf.mxu3 }
 0xa25   : > { %v2195_v47 = vadd.f32 %v2179_v43, %v1729_v23 }
 0xa27   : > { %v2207_v41 = vadd.f32 %v2549_v52, %v2195_v47 }
 0xa29   : > { %2215 = vst.msk [vmem:[%s3468_s24 + $0x20] sm:$0xff] %vm288_vm0, %v2207_v41 }
 0xa3d   : > { %v2182_v31 = vpop.f32.mrf.mxu3 }
 0xa3e   : > { %v2196_v34 = vadd.f32 %v2182_v31, %v1730_v63 }
 0xa40   : > { %v2208_v38 = vadd.f32 %v2549_v52, %v2196_v34 }
 0xa42   : > { %2216 = vst.msk [vmem:[%s3468_s24 + $0x28] sm:$0xff] %vm288_vm0, %v2208_v38 }
 0xa45   : > { %v2185_v40 = vpop.f32.mrf.mxu3 }
 0xa46   : > { %v2197_v7 = vadd.f32 %v2185_v40, %v1731_v26 }
 0xa48   : > { %v2209_v11 = vadd.f32 %v2549_v52, %v2197_v7 }
 0xa4a   : > { %2217 = vst.msk [vmem:[%s3468_s24 + $0x30] sm:$0xff] %vm288_vm0, %v2209_v11 }
 0xa4d   : > { %v2188_v54 = vpop.f32.mrf.mxu3 }
 0xa4e   : > { %v2198_v36 = vadd.f32 %v2188_v54, %v1732_v45 }
 0xa50   : > { %v2210_v6 = vadd.f32 %v2549_v52, %v2198_v36 }
 0xa52   : > { %2218 = vst.msk [vmem:[%s3468_s24 + $0x38] sm:$0xff] %vm288_vm0, %v2210_v6 }
 0xa53 PF: > { %s17_s21 = sadd.s32 1, %s2718_s21  }
 0xa54   : > { %p14_p7 = scmp.ge.s32.totalorder %s17_s21, 4  }
 0xa56   :  { %16 = sbr.rel (!%p14_p7) target bundleno = 1 (0x1), region = 82 }
 0xa5b   :  { %2241 = vsyncpa [#allocation3], 1 }
 0xa5c   :  { %2243 = vsyncpa [#allocation3 + $0x1], 1 }

</bundles_post_ra>
